<compile_context>
chip_gen: v6e
topology: v6e:2x2x1
jax: 0.10.0
libtpu: 0.0.40
codegen_flags: <defaults>
</compile_context>

<pallas_src>
import jax
import jax.numpy as jnp
from jax import lax
from jax.experimental import pallas as pl
from jax.experimental.pallas import tpu as pltpu


EPS = 1e-5
GROUP = 6          # the torch module hard-codes .view(-1, 6, c, h, w)


def sgnet_forward(content, style, params, *,
                  compute_dtype=jnp.bfloat16, q_tile=256):
    """content, style: (B, C, H, W), B a multiple of 6.
    Returns (B//6, out_planes, H, W) float32."""
    B, C, Hh, Ww = content.shape
    assert B % GROUP == 0, "SGNet requires the batch to be a multiple of 6"
    HW = Hh * Ww
    G6 = B // GROUP

    wf, bf = params["f"]
    wg, bg = params["g"]
    wh, bh = params["h"]
    wo, bo = params["out"]
    Cout = wo.shape[0]

    # Natural (B, C, HW) layout: free reshape, no transpose pass, no f32 upcast.
    cf = content.reshape(B, C, HW)
    sf = style.reshape(B, C, HW)

    # 1x1-conv weights cast to bf16 ONCE (wrapper-side); biases stay f32.
    wf_c, wg_c, wh_c, wo_c = (w.astype(compute_dtype) for w in (wf, wg, wh, wo))
    bf_c, bg_c, bh_c, bo_c = (b.astype(jnp.float32) for b in (bf, bg, bh, bo))

    # Query tile: largest multiple of 128 (<= q_tile) that divides HW, else a
    # single full-width tile.  Demo: HW = 256 -> tq = 256, nq = 1.
    if HW <= q_tile:
        tq = HW
    else:
        tq = HW
        t = (q_tile // 128) * 128
        while t >= 128:
            if HW % t == 0:
                tq = t
                break
            t -= 128
    nq = HW // tq

    inv_hwm1 = 1.0 / max(HW - 1, 1)      # torch.var default: unbiased
    inv_group = 1.0 / GROUP

    def kernel(x_ref, y_ref, wf_ref, bf_ref, wg_ref, bg_ref, wh_ref, bh_ref,
               wo_ref, bo_ref, out_ref, ft_ref, acc_ref):
        s = pl.program_id(1)                         # sample index within group

        xf = x_ref[0].astype(jnp.float32)            # (C, HW) content sample
        yf = y_ref[0].astype(jnp.float32)            # (C, HW) style sample

        def mvn(v):
            # per-channel mean / unbiased variance over HW: XLU lane reductions
            # + EUP rsqrt — no MXU involvement, no selector matmuls.
            mean = jnp.mean(v, axis=-1, keepdims=True)
            d = v - mean
            var = jnp.sum(d * d, axis=-1, keepdims=True) * inv_hwm1
            return d * lax.rsqrt(var + EPS)

        xn = mvn(xf).astype(compute_dtype)
        yn = mvn(yf).astype(compute_dtype)

        # 1x1 convs == channel matmuls, bf16 operands / f32 accumulation.
        F = jnp.dot(wf_ref[...], xn, preferred_element_type=jnp.float32) + bf_ref[...]
        G = jnp.dot(wg_ref[...], yn, preferred_element_type=jnp.float32) + bg_ref[...]
        Hm = jnp.dot(wh_ref[...], y_ref[0].astype(compute_dtype),
                     preferred_element_type=jnp.float32) + bh_ref[...]

        # One (C, HW) transpose per sample so the score matmul is a plain
        # (tq, C) @ (C, HW) dot.  Cast before transposing when C is a lane
        # multiple (halves XLU transpose bytes); at demo-scale C < 128 a packed
        # bf16 transpose onto an 8-wide minor dim risks an unsupported
        # relayout, so transpose in f32 and cast after.
        if C % 128 == 0:
            ft_ref[...] = F.astype(compute_dtype).T
        else:
            ft_ref[...] = F.T.astype(compute_dtype)
        Gb = G.astype(compute_dtype)                 # (C, HW) keys
        Hb = Hm.astype(compute_dtype)                # (C, HW) values

        @pl.when(s == 0)
        def _():
            acc_ref[...] = jnp.zeros_like(acc_ref)

        acc_ref[...] += yf                           # style term of mean(O + style)

        def q_step(q0):
            Fq = ft_ref[pl.ds(q0, tq), :]            # (tq, C) bf16
            S = jnp.dot(Fq, Gb, preferred_element_type=jnp.float32)   # (tq, HW)
            S = S - jnp.max(S, axis=-1, keepdims=True)
            P = jnp.exp(S)
            P = P * pl.reciprocal(jnp.sum(P, axis=-1, keepdims=True), approx=True)
            # O tile (C, tq) = H (C, HW) @ P^T : transposed-RHS contraction is
            # MXU-native (no XLU transpose of P).
            Ot = lax.dot_general(Hb, P.astype(compute_dtype),
                                 (((1,), (1,)), ((), ())),
                                 preferred_element_type=jnp.float32)
            acc_ref[:, pl.ds(q0, tq)] += Ot

        if nq == 1:
            q_step(0)
        else:
            def body(t, carry):
                q_step(pl.multiple_of(t * tq, tq))
                return carry
            lax.fori_loop(0, nq, body, 0)

        # Last sample of the group: mean over 6 samples, out_conv, one
        # lane-dense (Cout, HW) store.
        @pl.when(s == GROUP - 1)
        def _():
            m = (acc_ref[...] * inv_group).astype(compute_dtype)
            o = (jnp.dot(wo_ref[...], m, preferred_element_type=jnp.float32)
                 + bo_ref[...])
            out_ref[0] = o.astype(out_ref.dtype)

    feat_spec = pl.BlockSpec((1, C, HW), lambda g, s: (g * GROUP + s, 0, 0))

    def const_spec(shape):
        return pl.BlockSpec(shape, lambda g, s, _n=len(shape): (0,) * _n)

    in_bytes = jnp.dtype(cf.dtype).itemsize
    cost = pl.CostEstimate(
        flops=int(B * (6 * C * C * HW + 4 * C * HW * HW + 12 * C * HW)
                  + G6 * 2 * Cout * C * HW),
        transcendentals=int(B * (HW * HW + 2 * C)),
        bytes_accessed=int(2 * B * C * HW * in_bytes + G6 * Cout * HW * 4
                           + (3 * C * C + Cout * C) * 2 + (3 * C + Cout) * 4),
    )

    out = pl.pallas_call(
        kernel,
        out_shape=jax.ShapeDtypeStruct((G6, Cout, HW), jnp.float32),
        grid=(G6, GROUP),
        in_specs=[feat_spec, feat_spec,
                  const_spec((C, C)), const_spec((C, 1)),
                  const_spec((C, C)), const_spec((C, 1)),
                  const_spec((C, C)), const_spec((C, 1)),
                  const_spec((Cout, C)), const_spec((Cout, 1))],
        out_specs=pl.BlockSpec((1, Cout, HW), lambda g, s: (g, 0, 0)),
        scratch_shapes=[pltpu.VMEM((HW, C), compute_dtype),   # F^T of this sample
                        pltpu.VMEM((C, HW), jnp.float32)],    # sum_s (O_s + style_s)
        compiler_params=pltpu.CompilerParams(
            dimension_semantics=("parallel", "arbitrary"),
            vmem_limit_bytes=32 * 1024 * 1024),
        cost_estimate=cost,
    )(cf, sf, wf_c, bf_c, wg_c, bg_c, wh_c, bh_c, wo_c, bo_c)

    return out.reshape(G6, Cout, Hh, Ww)


# ---------------- plain-JAX reference (mirrors the torch code) ----------------
def _mvn_ref(feat):
    N, C, H, W = feat.shape
    flat = feat.reshape(N, C, -1)
    mean = flat.mean(axis=2).reshape(N, C, 1, 1)
    var = flat.var(axis=2, ddof=1) + EPS          # torch.var default: unbiased
    std = jnp.sqrt(var).reshape(N, C, 1, 1)
    return (feat - mean) / std


def sgnet_reference(content, style, params):
    def conv1x1(x, w, b):
        return jnp.einsum('oc,nchw->nohw', w, x) + b.reshape(1, -1, 1, 1)

    wf, bf = params["f"]; wg, bg = params["g"]
    wh, bh = params["h"]; wo, bo = params["out"]

    F = conv1x1(_mvn_ref(content), wf, bf)
    G = conv1x1(_mvn_ref(style), wg, bg)
    H = conv1x1(style, wh, bh)
    b, c, h, w = F.shape
    Fm = F.reshape(b, c, h * w).transpose(0, 2, 1)     # (b, hw, c)
    Gm = G.reshape(b, c, h * w)                        # (b, c, hw)
    S = jnp.einsum('bic,bcj->bij', Fm, Gm)             # (b, hw, hw)
    S = jax.nn.softmax(S, axis=-1)
    Hm = H.reshape(b, c, h * w)
    O = jnp.einsum('bcj,bij->bci', Hm, S)              # (b, c, hw)
    O = O.reshape(-1, GROUP, c, h, w) + style.reshape(-1, GROUP, c, h, w)
    O = O.mean(axis=1)
    return conv1x1(O, wo, bo)


def _make_params(key, in_planes, out_planes):
    ks = jax.random.split(key, 8)

    def conv_p(kw, kb, cin, cout):
        w = jax.random.normal(kw, (cout, cin), jnp.float32) / jnp.sqrt(cin)
        b = 0.1 * jax.random.normal(kb, (cout, 1), jnp.float32)
        return w, b

    return {
        "f":   conv_p(ks[0], ks[1], in_planes, in_planes),
        "g":   conv_p(ks[2], ks[3], in_planes, in_planes),
        "h":   conv_p(ks[4], ks[5], in_planes, in_planes),
        "out": conv_p(ks[6], ks[7], in_planes, out_planes),
    }


if __name__ == "__main__":
    # B must be a multiple of 6 (two groups -> grid (2, 6) = 12 pipeline steps).
    # H = W = 16 gives HW = 256: lane-dense stores and tile-aligned slices.
    B, in_planes, out_planes, H, W = 12, 8, 16, 16, 16
    key = jax.random.PRNGKey(0)
    kc, ks_, kp = jax.random.split(key, 3)
    content = jax.random.normal(kc, (B, in_planes, H, W), jnp.float32)
    style = jax.random.normal(ks_, (B, in_planes, H, W), jnp.float32)
    params = _make_params(kp, in_planes, out_planes)

    # Model-native activations are bf16 (halves the kernel's HBM->VMEM DMA).
    content_b = content.astype(jnp.bfloat16)
    style_b = style.astype(jnp.bfloat16)

    out = sgnet_forward(content_b, style_b, params)
    jax.block_until_ready(out)

    # Reference at matched parameter/activation precision (bf16-quantized
    # weights and inputs, f32 math) so the check isolates kernel rounding.
    params_q = {k: (w.astype(jnp.bfloat16).astype(jnp.float32), b)
                for k, (w, b) in params.items()}
    ref = sgnet_reference(content_b.astype(jnp.float32),
                          style_b.astype(jnp.float32), params_q)

    assert out.shape == (B // GROUP, out_planes, H, W), out.shape

    # bf16 matmul operands (f32 accumulation) + approximate softmax reciprocal:
    # compare relative to the output scale.
    max_err = float(jnp.max(jnp.abs(out - ref)))
    scale = float(jnp.max(jnp.abs(ref)))
    assert max_err <= 5e-2 * scale + 1e-3, (max_err, scale)

    print("KERNEL_OK")
</pallas_src>

<mosaic_0001>
module attributes {stable_mosaic.version = 11 : i64} {
  func.func @kernel(%arg0: i32, %arg1: i32, %arg2: memref<1x8x256xbf16, #tpu.memory_space<vmem>>, %arg3: memref<1x8x256xbf16, #tpu.memory_space<vmem>>, %arg4: memref<8x8xbf16, #tpu.memory_space<vmem>>, %arg5: memref<8x1xf32, #tpu.memory_space<vmem>>, %arg6: memref<8x8xbf16, #tpu.memory_space<vmem>>, %arg7: memref<8x1xf32, #tpu.memory_space<vmem>>, %arg8: memref<8x8xbf16, #tpu.memory_space<vmem>>, %arg9: memref<8x1xf32, #tpu.memory_space<vmem>>, %arg10: memref<16x8xbf16, #tpu.memory_space<vmem>>, %arg11: memref<16x1xf32, #tpu.memory_space<vmem>>, %arg12: memref<1x16x256xf32, #tpu.memory_space<vmem>>, %arg13: memref<256x8xbf16, #tpu.memory_space<vmem>>, %arg14: memref<8x256xf32, #tpu.memory_space<vmem>>) attributes {dimension_semantics = [#tpu.dimension_semantics<parallel>, #tpu.dimension_semantics<arbitrary>], iteration_bounds = array<i64: 2, 6>, scalar_prefetch = 0 : i64, scratch_operands = 2 : i64, tpu.core_type = #tpu.core_type<tc>, window_params = [{transform_indices = @transform_0, window_bounds = array<i64: 1, 8, 256>}, {transform_indices = @transform_1, window_bounds = array<i64: 1, 8, 256>}, {pipeline_mode = #tpu.pipeline_mode<synchronous>, transform_indices = @transform_2, window_bounds = array<i64: 8, 8>}, {pipeline_mode = #tpu.pipeline_mode<synchronous>, transform_indices = @transform_3, window_bounds = array<i64: 8, 1>}, {pipeline_mode = #tpu.pipeline_mode<synchronous>, transform_indices = @transform_4, window_bounds = array<i64: 8, 8>}, {pipeline_mode = #tpu.pipeline_mode<synchronous>, transform_indices = @transform_5, window_bounds = array<i64: 8, 1>}, {pipeline_mode = #tpu.pipeline_mode<synchronous>, transform_indices = @transform_6, window_bounds = array<i64: 8, 8>}, {pipeline_mode = #tpu.pipeline_mode<synchronous>, transform_indices = @transform_7, window_bounds = array<i64: 8, 1>}, {pipeline_mode = #tpu.pipeline_mode<synchronous>, transform_indices = @transform_8, window_bounds = array<i64: 16, 8>}, {pipeline_mode = #tpu.pipeline_mode<synchronous>, transform_indices = @transform_9, window_bounds = array<i64: 16, 1>}, {transform_indices = @transform_10, window_bounds = array<i64: 1, 16, 256>}]} {
    %c0 = arith.constant 0 : index
    %c0_0 = arith.constant 0 : index
    %c0_1 = arith.constant 0 : index
    %0 = vector.load %arg2[%c0, %c0_0, %c0_1] : memref<1x8x256xbf16, #tpu.memory_space<vmem>>, vector<1x8x256xbf16>
    %1 = vector.shape_cast %0 : vector<1x8x256xbf16> to vector<8x256xbf16>
    %2 = arith.extf %1 : vector<8x256xbf16> to vector<8x256xf32>
    %c0_2 = arith.constant 0 : index
    %c0_3 = arith.constant 0 : index
    %c0_4 = arith.constant 0 : index
    %3 = vector.load %arg3[%c0_2, %c0_3, %c0_4] : memref<1x8x256xbf16, #tpu.memory_space<vmem>>, vector<1x8x256xbf16>
    %4 = vector.shape_cast %3 : vector<1x8x256xbf16> to vector<8x256xbf16>
    %5 = arith.extf %4 : vector<8x256xbf16> to vector<8x256xf32>
    %cst = arith.constant dense<0.000000e+00> : vector<8xf32>
    %6 = vector.multi_reduction <add>, %2, %cst [1] : vector<8x256xf32> to vector<8xf32>
    %7 = vector.shape_cast %6 : vector<8xf32> to vector<8x1xf32>
    %cst_5 = arith.constant 2.560000e+02 : f32
    %8 = vector.broadcast %cst_5 : f32 to vector<8x1xf32>
    %9 = arith.divf %7, %8 : vector<8x1xf32>
    %10 = vector.broadcast %9 : vector<8x1xf32> to vector<8x256xf32>
    %11 = arith.subf %2, %10 : vector<8x256xf32>
    %12 = arith.mulf %11, %11 : vector<8x256xf32>
    %cst_6 = arith.constant dense<0.000000e+00> : vector<8xf32>
    %13 = vector.multi_reduction <add>, %12, %cst_6 [1] : vector<8x256xf32> to vector<8xf32>
    %14 = vector.shape_cast %13 : vector<8xf32> to vector<8x1xf32>
    %cst_7 = arith.constant 0.00392156886 : f32
    %15 = vector.broadcast %cst_7 : f32 to vector<8x1xf32>
    %16 = arith.mulf %14, %15 : vector<8x1xf32>
    %cst_8 = arith.constant 9.99999974E-6 : f32
    %17 = vector.broadcast %cst_8 : f32 to vector<8x1xf32>
    %18 = arith.addf %16, %17 : vector<8x1xf32>
    %19 = math.rsqrt %18 : vector<8x1xf32>
    %20 = vector.broadcast %19 : vector<8x1xf32> to vector<8x256xf32>
    %21 = arith.mulf %11, %20 : vector<8x256xf32>
    %22 = arith.truncf %21 : vector<8x256xf32> to vector<8x256xbf16>
    %cst_9 = arith.constant dense<0.000000e+00> : vector<8xf32>
    %23 = vector.multi_reduction <add>, %5, %cst_9 [1] : vector<8x256xf32> to vector<8xf32>
    %24 = vector.shape_cast %23 : vector<8xf32> to vector<8x1xf32>
    %cst_10 = arith.constant 2.560000e+02 : f32
    %25 = vector.broadcast %cst_10 : f32 to vector<8x1xf32>
    %26 = arith.divf %24, %25 : vector<8x1xf32>
    %27 = vector.broadcast %26 : vector<8x1xf32> to vector<8x256xf32>
    %28 = arith.subf %5, %27 : vector<8x256xf32>
    %29 = arith.mulf %28, %28 : vector<8x256xf32>
    %cst_11 = arith.constant dense<0.000000e+00> : vector<8xf32>
    %30 = vector.multi_reduction <add>, %29, %cst_11 [1] : vector<8x256xf32> to vector<8xf32>
    %31 = vector.shape_cast %30 : vector<8xf32> to vector<8x1xf32>
    %cst_12 = arith.constant 0.00392156886 : f32
    %32 = vector.broadcast %cst_12 : f32 to vector<8x1xf32>
    %33 = arith.mulf %31, %32 : vector<8x1xf32>
    %cst_13 = arith.constant 9.99999974E-6 : f32
    %34 = vector.broadcast %cst_13 : f32 to vector<8x1xf32>
    %35 = arith.addf %33, %34 : vector<8x1xf32>
    %36 = math.rsqrt %35 : vector<8x1xf32>
    %37 = vector.broadcast %36 : vector<8x1xf32> to vector<8x256xf32>
    %38 = arith.mulf %28, %37 : vector<8x256xf32>
    %39 = arith.truncf %38 : vector<8x256xf32> to vector<8x256xbf16>
    %c0_14 = arith.constant 0 : index
    %c0_15 = arith.constant 0 : index
    %40 = vector.load %arg4[%c0_14, %c0_15] : memref<8x8xbf16, #tpu.memory_space<vmem>>, vector<8x8xbf16>
    %cst_16 = arith.constant dense<0.000000e+00> : vector<8x256xf32>
    %41 = tpu.matmul %40, %22, %cst_16 {dimension_numbers = #tpu.dot_dimension_numbers<[1], [0], [0], [1], [0, 0, 1, 1], [], []>} : vector<8x8xbf16>, vector<8x256xbf16>, vector<8x256xf32> -> vector<8x256xf32>
    %c0_17 = arith.constant 0 : index
    %c0_18 = arith.constant 0 : index
    %42 = vector.load %arg5[%c0_17, %c0_18] : memref<8x1xf32, #tpu.memory_space<vmem>>, vector<8x1xf32>
    %43 = vector.broadcast %42 : vector<8x1xf32> to vector<8x256xf32>
    %44 = arith.addf %41, %43 : vector<8x256xf32>
    %c0_19 = arith.constant 0 : index
    %c0_20 = arith.constant 0 : index
    %45 = vector.load %arg6[%c0_19, %c0_20] : memref<8x8xbf16, #tpu.memory_space<vmem>>, vector<8x8xbf16>
    %cst_21 = arith.constant dense<0.000000e+00> : vector<8x256xf32>
    %46 = tpu.matmul %45, %39, %cst_21 {dimension_numbers = #tpu.dot_dimension_numbers<[1], [0], [0], [1], [0, 0, 1, 1], [], []>} : vector<8x8xbf16>, vector<8x256xbf16>, vector<8x256xf32> -> vector<8x256xf32>
    %c0_22 = arith.constant 0 : index
    %c0_23 = arith.constant 0 : index
    %47 = vector.load %arg7[%c0_22, %c0_23] : memref<8x1xf32, #tpu.memory_space<vmem>>, vector<8x1xf32>
    %48 = vector.broadcast %47 : vector<8x1xf32> to vector<8x256xf32>
    %49 = arith.addf %46, %48 : vector<8x256xf32>
    %c0_24 = arith.constant 0 : index
    %c0_25 = arith.constant 0 : index
    %50 = vector.load %arg8[%c0_24, %c0_25] : memref<8x8xbf16, #tpu.memory_space<vmem>>, vector<8x8xbf16>
    %c0_26 = arith.constant 0 : index
    %c0_27 = arith.constant 0 : index
    %c0_28 = arith.constant 0 : index
    %51 = vector.load %arg3[%c0_26, %c0_27, %c0_28] : memref<1x8x256xbf16, #tpu.memory_space<vmem>>, vector<1x8x256xbf16>
    %52 = vector.shape_cast %51 : vector<1x8x256xbf16> to vector<8x256xbf16>
    %cst_29 = arith.constant dense<0.000000e+00> : vector<8x256xf32>
    %53 = tpu.matmul %50, %52, %cst_29 {dimension_numbers = #tpu.dot_dimension_numbers<[1], [0], [0], [1], [0, 0, 1, 1], [], []>} : vector<8x8xbf16>, vector<8x256xbf16>, vector<8x256xf32> -> vector<8x256xf32>
    %c0_30 = arith.constant 0 : index
    %c0_31 = arith.constant 0 : index
    %54 = vector.load %arg9[%c0_30, %c0_31] : memref<8x1xf32, #tpu.memory_space<vmem>>, vector<8x1xf32>
    %55 = vector.broadcast %54 : vector<8x1xf32> to vector<8x256xf32>
    %56 = arith.addf %53, %55 : vector<8x256xf32>
    %57 = tpu.transpose %44, [1, 0] : vector<8x256xf32> -> vector<256x8xf32>
    %58 = arith.truncf %57 : vector<256x8xf32> to vector<256x8xbf16>
    %c0_32 = arith.constant 0 : index
    %c0_33 = arith.constant 0 : index
    %59 = vector.load %arg13[%c0_32, %c0_33] : memref<256x8xbf16, #tpu.memory_space<vmem>>, vector<256x8xbf16>
    tpu.vector_store %arg13[%c0_32, %c0_33], %58 {strides = array<i32>} : memref<256x8xbf16, #tpu.memory_space<vmem>>, vector<256x8xbf16>,
    %60 = arith.truncf %49 : vector<8x256xf32> to vector<8x256xbf16>
    %61 = arith.truncf %56 : vector<8x256xf32> to vector<8x256xbf16>
    %c0_i32 = arith.constant 0 : i32
    %62 = arith.cmpi eq, %arg1, %c0_i32 : i32
    %63 = arith.extui %62 : i1 to i32
    %c0_i32_34 = arith.constant 0 : i32
    %64 = arith.cmpi ne, %63, %c0_i32_34 : i32
    scf.if %64 {
      %cst_50 = arith.constant 0.000000e+00 : f32
      %88 = vector.broadcast %cst_50 : f32 to vector<8x256xf32>
      %c0_51 = arith.constant 0 : index
      %c0_52 = arith.constant 0 : index
      %89 = vector.load %arg14[%c0_51, %c0_52] : memref<8x256xf32, #tpu.memory_space<vmem>>, vector<8x256xf32>
      tpu.vector_store %arg14[%c0_51, %c0_52], %88 {strides = array<i32>} : memref<8x256xf32, #tpu.memory_space<vmem>>, vector<8x256xf32>,
    } else {
    }
    %c0_35 = arith.constant 0 : index
    %c0_36 = arith.constant 0 : index
    %65 = vector.load %arg14[%c0_35, %c0_36] : memref<8x256xf32, #tpu.memory_space<vmem>>, vector<8x256xf32>
    %66 = arith.addf %65, %5 : vector<8x256xf32>
    %c0_37 = arith.constant 0 : index
    %c0_38 = arith.constant 0 : index
    %67 = vector.load %arg14[%c0_37, %c0_38] : memref<8x256xf32, #tpu.memory_space<vmem>>, vector<8x256xf32>
    tpu.vector_store %arg14[%c0_37, %c0_38], %66 {strides = array<i32>} : memref<8x256xf32, #tpu.memory_space<vmem>>, vector<8x256xf32>,
    %c0_39 = arith.constant 0 : index
    %c0_40 = arith.constant 0 : index
    %68 = vector.load %arg13[%c0_39, %c0_40] : memref<256x8xbf16, #tpu.memory_space<vmem>>, vector<256x8xbf16>
    %cst_41 = arith.constant dense<0.000000e+00> : vector<256x256xf32>
    %69 = tpu.matmul %68, %60, %cst_41 {dimension_numbers = #tpu.dot_dimension_numbers<[1], [0], [0], [1], [0, 0, 1, 1], [], []>} : vector<256x8xbf16>, vector<8x256xbf16>, vector<256x256xf32> -> vector<256x256xf32>
    %cst_42 = arith.constant dense<0xFF800000> : vector<256xf32>
    %70 = vector.multi_reduction <maximumf>, %69, %cst_42 [1] : vector<256x256xf32> to vector<256xf32>
    %71 = vector.shape_cast %70 : vector<256xf32> to vector<256x1xf32>
    %72 = vector.broadcast %71 : vector<256x1xf32> to vector<256x256xf32>
    %73 = arith.subf %69, %72 : vector<256x256xf32>
    %74 = math.exp %73 : vector<256x256xf32>
    %cst_43 = arith.constant dense<0.000000e+00> : vector<256xf32>
    %75 = vector.multi_reduction <add>, %74, %cst_43 [1] : vector<256x256xf32> to vector<256xf32>
    %76 = vector.shape_cast %75 : vector<256xf32> to vector<256x1xf32>
    %77 = tpu.reciprocal %76 {approx = true} : vector<256x1xf32> -> vector<256x1xf32>
    %78 = vector.broadcast %77 : vector<256x1xf32> to vector<256x256xf32>
    %79 = arith.mulf %74, %78 : vector<256x256xf32>
    %80 = arith.truncf %79 : vector<256x256xf32> to vector<256x256xbf16>
    %cst_44 = arith.constant dense<0.000000e+00> : vector<8x256xf32>
    %81 = tpu.matmul %61, %80, %cst_44 {dimension_numbers = #tpu.dot_dimension_numbers<[1], [1], [0], [0], [0, 0, 1, 0], [], []>} : vector<8x256xbf16>, vector<256x256xbf16>, vector<8x256xf32> -> vector<8x256xf32>
    %c0_45 = arith.constant 0 : index
    %c0_46 = arith.constant 0 : index
    %82 = vector.load %arg14[%c0_45, %c0_46] : memref<8x256xf32, #tpu.memory_space<vmem>>, vector<8x256xf32>
    %83 = arith.addf %82, %81 : vector<8x256xf32>
    %c0_47 = arith.constant 0 : index
    %c0_48 = arith.constant 0 : index
    %84 = vector.load %arg14[%c0_47, %c0_48] : memref<8x256xf32, #tpu.memory_space<vmem>>, vector<8x256xf32>
    tpu.vector_store %arg14[%c0_47, %c0_48], %83 {strides = array<i32>} : memref<8x256xf32, #tpu.memory_space<vmem>>, vector<8x256xf32>,
    %c5_i32 = arith.constant 5 : i32
    %85 = arith.cmpi eq, %arg1, %c5_i32 : i32
    %86 = arith.extui %85 : i1 to i32
    %c0_i32_49 = arith.constant 0 : i32
    %87 = arith.cmpi ne, %86, %c0_i32_49 : i32
    scf.if %87 {
      %c0_50 = arith.constant 0 : index
      %c0_51 = arith.constant 0 : index
      %88 = vector.load %arg14[%c0_50, %c0_51] : memref<8x256xf32, #tpu.memory_space<vmem>>, vector<8x256xf32>
      %cst_52 = arith.constant 0.166666672 : f32
      %89 = vector.broadcast %cst_52 : f32 to vector<8x256xf32>
      %90 = arith.mulf %88, %89 : vector<8x256xf32>
      %91 = arith.truncf %90 : vector<8x256xf32> to vector<8x256xbf16>
      %c0_53 = arith.constant 0 : index
      %c0_54 = arith.constant 0 : index
      %92 = vector.load %arg10[%c0_53, %c0_54] : memref<16x8xbf16, #tpu.memory_space<vmem>>, vector<16x8xbf16>
      %cst_55 = arith.constant dense<0.000000e+00> : vector<16x256xf32>
      %93 = tpu.matmul %92, %91, %cst_55 {dimension_numbers = #tpu.dot_dimension_numbers<[1], [0], [0], [1], [0, 0, 1, 1], [], []>} : vector<16x8xbf16>, vector<8x256xbf16>, vector<16x256xf32> -> vector<16x256xf32>
      %c0_56 = arith.constant 0 : index
      %c0_57 = arith.constant 0 : index
      %94 = vector.load %arg11[%c0_56, %c0_57] : memref<16x1xf32, #tpu.memory_space<vmem>>, vector<16x1xf32>
      %95 = vector.broadcast %94 : vector<16x1xf32> to vector<16x256xf32>
      %96 = arith.addf %93, %95 : vector<16x256xf32>
      %c0_58 = arith.constant 0 : index
      %c0_59 = arith.constant 0 : index
      %c0_60 = arith.constant 0 : index
      %97 = vector.load %arg12[%c0_58, %c0_59, %c0_60] : memref<1x16x256xf32, #tpu.memory_space<vmem>>, vector<1x16x256xf32>
      %98 = vector.shape_cast %97 : vector<1x16x256xf32> to vector<16x256xf32>
      %99 = vector.shape_cast %96 : vector<16x256xf32> to vector<1x16x256xf32>
      tpu.vector_store %arg12[%c0_58, %c0_59, %c0_60], %99 {strides = array<i32>} : memref<1x16x256xf32, #tpu.memory_space<vmem>>, vector<1x16x256xf32>,
    } else {
    }
    return
  }
  func.func @transform_0(%arg0: i32, %arg1: i32) -> (i32, i32, i32) {
    %c6_i32 = arith.constant 6 : i32
    %0 = arith.muli %arg0, %c6_i32 : i32
    %1 = arith.addi %0, %arg1 : i32
    %c0_i32 = arith.constant 0 : i32
    %c0_i32_0 = arith.constant 0 : i32
    %c0_i32_1 = arith.constant 0 : i32
    return %1, %c0_i32, %c0_i32_0 : i32, i32, i32
  }
  func.func @transform_1(%arg0: i32, %arg1: i32) -> (i32, i32, i32) {
    %c6_i32 = arith.constant 6 : i32
    %0 = arith.muli %arg0, %c6_i32 : i32
    %1 = arith.addi %0, %arg1 : i32
    %c0_i32 = arith.constant 0 : i32
    %c0_i32_0 = arith.constant 0 : i32
    %c0_i32_1 = arith.constant 0 : i32
    return %1, %c0_i32, %c0_i32_0 : i32, i32, i32
  }
  func.func @transform_2(%arg0: i32, %arg1: i32) -> (i32, i32) {
    %c0_i32 = arith.constant 0 : i32
    %c0_i32_0 = arith.constant 0 : i32
    %c0_i32_1 = arith.constant 0 : i32
    return %c0_i32, %c0_i32_0 : i32, i32
  }
  func.func @transform_3(%arg0: i32, %arg1: i32) -> (i32, i32) {
    %c0_i32 = arith.constant 0 : i32
    %c0_i32_0 = arith.constant 0 : i32
    %c0_i32_1 = arith.constant 0 : i32
    return %c0_i32, %c0_i32_0 : i32, i32
  }
  func.func @transform_4(%arg0: i32, %arg1: i32) -> (i32, i32) {
    %c0_i32 = arith.constant 0 : i32
    %c0_i32_0 = arith.constant 0 : i32
    %c0_i32_1 = arith.constant 0 : i32
    return %c0_i32, %c0_i32_0 : i32, i32
  }
  func.func @transform_5(%arg0: i32, %arg1: i32) -> (i32, i32) {
    %c0_i32 = arith.constant 0 : i32
    %c0_i32_0 = arith.constant 0 : i32
    %c0_i32_1 = arith.constant 0 : i32
    return %c0_i32, %c0_i32_0 : i32, i32
  }
  func.func @transform_6(%arg0: i32, %arg1: i32) -> (i32, i32) {
    %c0_i32 = arith.constant 0 : i32
    %c0_i32_0 = arith.constant 0 : i32
    %c0_i32_1 = arith.constant 0 : i32
    return %c0_i32, %c0_i32_0 : i32, i32
  }
  func.func @transform_7(%arg0: i32, %arg1: i32) -> (i32, i32) {
    %c0_i32 = arith.constant 0 : i32
    %c0_i32_0 = arith.constant 0 : i32
    %c0_i32_1 = arith.constant 0 : i32
    return %c0_i32, %c0_i32_0 : i32, i32
  }
  func.func @transform_8(%arg0: i32, %arg1: i32) -> (i32, i32) {
    %c0_i32 = arith.constant 0 : i32
    %c0_i32_0 = arith.constant 0 : i32
    %c0_i32_1 = arith.constant 0 : i32
    return %c0_i32, %c0_i32_0 : i32, i32
  }
  func.func @transform_9(%arg0: i32, %arg1: i32) -> (i32, i32) {
    %c0_i32 = arith.constant 0 : i32
    %c0_i32_0 = arith.constant 0 : i32
    %c0_i32_1 = arith.constant 0 : i32
    return %c0_i32, %c0_i32_0 : i32, i32
  }
  func.func @transform_10(%arg0: i32, %arg1: i32) -> (i32, i32, i32) {
    %c0_i32 = arith.constant 0 : i32
    %c0_i32_0 = arith.constant 0 : i32
    %c0_i32_1 = arith.constant 0 : i32
    return %arg0, %c0_i32, %c0_i32_0 : i32, i32, i32
  }
}

</mosaic_0001>

<bundles_post_ra>
// kernel: tpu_custom_call.1
= control target key start
LH: loop header
LB: loop body
LE: loop exit
PB: predicated region body
PF: predicated region fallthrough
CT: control target
= control target key end

     0   :  { %s3734_s0 = inlined_call_operand.hbm [shape: bf16[12,8,256], index: 0, kind: input, shape index: {}]   ;;  %s3735_s1 = inlined_call_operand.hbm [shape: bf16[12,8,256], index: 1, kind: input, shape index: {}]   ;;  %s3736_s2 = inlined_call_operand.vmem [shape: bf16[8,8], index: 2, kind: input, shape index: {}]   ;;  %s3737_s3 = inlined_call_operand.vmem [shape: f32[8,1], index: 3, kind: input, shape index: {}]   ;;  %s3738_s4 = inlined_call_operand.vmem [shape: bf16[8,8], index: 4, kind: input, shape index: {}]   ;;  %s3739_s5 = inlined_call_operand.vmem [shape: f32[8,1], index: 5, kind: input, shape index: {}]   ;;  %s3740_s6 = inlined_call_operand.vmem [shape: bf16[8,8], index: 6, kind: input, shape index: {}]   ;;  %s3741_s7 = inlined_call_operand.vmem [shape: f32[8,1], index: 7, kind: input, shape index: {}]   ;;  %s3742_s8 = inlined_call_operand.vmem [shape: bf16[16,8], index: 8, kind: input, shape index: {}]   ;;  %s3743_s9 = inlined_call_operand.vmem [shape: f32[16,1], index: 9, kind: input, shape index: {}]   ;;  %s3744_s10 = inlined_call_operand.hbm [shape: f32[2,16,256], index: 10, kind: output, shape index: {}]  }
   0x1   :  { %3785 = sst [smem:[#allocation41_spill]] %s3734_s0 }
   0x2   :  { %3786 = sst [smem:[#allocation42_spill]] %s3742_s8 }
   0x3   :  { %3787 = sst [smem:[#allocation43_spill]] %s3743_s9 }
   0x4   :  { %3788 = sst [smem:[#allocation44_spill]] %s3744_s10 }
   0x5   :  { %15 = vsyncpa [#allocation5], 0 }
   0x6   :  { %17 = vsyncpa [#allocation5 + $0x1], 0 }
   0x7   :  { %18 = vsyncpa [#allocation8], 0 }
   0x8   :  { %20 = vsyncpa [#allocation8 + $0x1], 0 }
   0x9   :  { %21 = vsyncpa [#allocation6], 0 }
   0xa   :  { %23 = vsyncpa [#allocation6 + $0x1], 0  ;;  %s2823_s13 = smov 0   ;;  %s2825_s14 = smov 0  }
   0xb   :  { %s2827_s15 = smov 0   ;;  %s2829_s16 = smov 0  }
   0xc   :  { %s2831_s17 = smov 0   ;;  %s2833_s18 = smov 0  }
   0xd   :  { %s2835_s19 = smov 0   ;;  %s2837_s20 = smov 0  }
   0xe   :  { %s2839_s21 = smov 0   ;;  %s2841_s22 = smov 0  }
   0xf   :  { %s2843_s23 = smov 0  }
  0x10 LB: > { %3789 = sst [smem:[#allocation13_spill]] %s2738_s18  ;;  %s2033_s24 = sadd.s32 4294967295, %s2758_s23   ;;  %s2758_s23 = sphi %s2843_s23, %s29_s23   ;;  %s2754_s22 = sphi %s2841_s22, %s3880_s22   ;;  %s2750_s21 = sphi %s2839_s21, %s3879_s21   ;;  %s2746_s20 = sphi %s2837_s20, %s3886_s20   ;;  %s2742_s19 = sphi %s2835_s19, %s3877_s19   ;;  %s2738_s18 = sphi %s2833_s18, %s3876_s18   ;;  %s2734_s17 = sphi %s2831_s17, %s3885_s17   ;;  %s2730_s16 = sphi %s2829_s16, %s3884_s16   ;;  %s2726_s15 = sphi %s2827_s15, %s3883_s15   ;;  %s2722_s14 = sphi %s2825_s14, %s3882_s14   ;;  %s2718_s13 = sphi %s2823_s13, %s3881_s13  }
  0x11   : > { %3790 = sst [smem:[#allocation14_spill]] %s2746_s20  ;;  %s38_s26 = sadd.s32 1, %s2750_s21 }
  0x12   : > { %3791 = sst [smem:[#allocation15_spill]] %s2750_s21  ;;  %s41_s27 = sadd.s32 1, %s2754_s22 }
  0x13   : > { %3792 = sst [smem:[#allocation16_spill]] %s2754_s22  ;;  %p39_p0 = scmp.ge.s32.totalorder %s38_s26, 6 }
  0x14   : > { %s45_s28 = smul.u32 6, %s2754_s22  ;;  %s52_s29 = sadd.s32 1, %s2738_s18 }
  0x15   : > { %p59_p1 = scmp.ne.s32.totalorder %s2738_s18, %s2734_s17  ;;  %s3888_s26 = smov (%p39_p0, %s38_s26), 0 }
  0x16   : > { %3793 = sst [smem:[#allocation17_spill]] %s3888_s26  ;;  %s3890_s27 = smov (!%p39_p0, %s41_s27), %s2754_s22 }
  0x17   : > { %s2888_s30 = sadd.s32 %s2750_s21, %s45_s28  ;;  %p60_p2 = scmp.eq.s32.totalorder %s2758_s23, 0 }
  0x18   : > { %p43_p3 = scmp.ge.s32.totalorder %s3890_s27, 2  ;;  %p65_p4 = scmp.ne.s32.totalorder %s2734_s17, %s2730_s16 }
  0x19   : > { %p2892_p5 = por %p60_p2, %p59_p1  ;;  %p66_p6 = scmp.eq.s32.totalorder %s2033_s24, 0 }
  0x1a   : > { %s3892_s27 = smov (%p43_p3, %s3890_s27), 0  ;;  %s276_s28 = sadd.s32 1, %s2726_s15 }
  0x1b   : > { %3795 = sst [smem:[#allocation18_spill]] %s3892_s27  ;;  %p2898_p7 = por %p66_p6, %p65_p4 }
  0x1c   : > { %s47_s16 = smul.u32 6, %s3892_s27  ;;  %s273_s25 = ssub.s32 %s2754_s22, %s3892_s27 }
  0x1d   : > { %p274_p8 = scmp.eq.s32.totalorder %s273_s25, 0  ;;  %p286_p9 = scmp.ne.s32.totalorder %s2726_s15, %s2722_s14 }
  0x1e   : > { %s48_s21 = sadd.s32 %s47_s16, %s3888_s26  ;;  %p287_p10 = scmp.eq.s32.totalorder %s2033_s24, 11 }
  0x1f   : > { %s49_s10 = ssub.s32 %s2888_s30, %s48_s21  ;;  %p292_p11 = scmp.ne.s32.totalorder %s2722_s14, %s2718_s13 }
  0x20   : > { %p50_p12 = scmp.eq.s32.totalorder %s49_s10, 0  ;;  %p2912_p13 = por %p287_p10, %p286_p9 }
  0x21   : > { %s2917_s8 = scalar_select %p274_p8, %s2726_s15, %s276_s28  }
  0x22   : > { %s2920_s9 = scalar_select %p50_p12, %s2738_s18, %s52_s29  }
  0x23   : > { %3798 = sst [smem:[#allocation19_spill]] %s2917_s8  ;;  %s3800_s27 = sadd.s32 4294967294, %s2758_s23  }
  0x24   : > { %3799 = sst [smem:[#allocation20_spill]] %s2920_s9  ;;  %p293_p0 = scmp.eq.s32.totalorder %s3800_s27, 11 }
  0x25   : > { %p2182_p1 = scmp.lt.s32.totalorder %s2758_s23, 12  ;;  %s2926_s25 = sand.u32 1, %s2738_s18  }
  0x26   : > { %p2928_p2 = por %p293_p0, %p292_p11  ;;  %s2037_s10 = sshll.u32 %s2926_s25, 3 }
  0x27   : > { %s2130_s24 = sshll.u32 %s2888_s30, 7  ;;  %s3802_s0 = sld [smem:[#allocation41_spill]] }
  0x28   : > { %s341_s22 = scalar_lea.vmem [#allocation4], %s2037_s10  ;;  %p2939_p3 = pnand %p2182_p1, %p2892_p5 }
  0x29   : > { %s351_s29 = sshll.u32 %s341_s22, 4  ;;  %p2043_p4 = scmp.ge.s32.totalorder %s2758_s23, 1  ;;  %s352_s29 = int_to_ptr.vmem [resolvable:$true] %s351_s29 }
  0x2a   : > { %p377_p6 = scmp.lt.s32.totalorder %s2758_s23, 13  ;;  %s338_s9 = scalar_lea.sflag [#allocation5], %s2926_s25 }
  0x2b   : > { %p2580_p8 = pneg %p2939_p3  ;;  %s2591_s30 = scalar_lea.vmem %s352_s29, 128 }
  0x2c   : > { %p2592_p9 = scmp.ne.s32.totalorder %s352_s29, %s2591_s30  ;;  %s2760_s22 = smov [#allocation4]  }
  0x2d   : > { %s349_s28 = scalar_lea.hbm %s3802_s0, %s2130_s24  ;;  %s2596_s26 = sshll.u32 %s2760_s22, 4  ;;  %s2597_s26 = int_to_ptr.vmem [resolvable:$false] %s2596_s26 }
  0x2e   : > { %p2594_p10 = pnand %p2592_p9, %p2580_p8  ;;  %s2598_s11 = scalar_lea.vmem %s2597_s26, 256 }
  0x2f   : > { %p2599_p5 = scmp.lt.s32.totalorder %s352_s29, %s2597_s26  ;;  %p2600_p12 = scmp.lt.s32.totalorder %s2598_s11, %s2591_s30 }
  0x30   : > { %p2595_p11 = pneg %p2594_p10 }
  0x31   : > { %p2601_p0 = por %p2600_p12, %p2599_p5 }
  0x33   : > { %p2602_p1 = pnand %p2601_p0, %p2595_p11 }
  0x35   : > { %2605 = shalt.err (!%p2602_p1)
}
  0x36   : > { %2174 = dma.hbm_to_vmem [thread:$0]  (!%p2939_p3), %s349_s28, 128, %s352_s29, %s338_s9  }
  0x37   : > { %p2957_p9 = pnand %p2043_p4, %p377_p6  ;;  %s370_s30 = scalar_lea.hbm %s3735_s1, %s2130_s24 }
  0x38   : > { %s362_s26 = scalar_lea.vmem [#allocation7], %s2037_s10  ;;  %s359_s18 = scalar_lea.sflag [#allocation8], %s2926_s25 }
  0x39   : > { %s372_s11 = sshll.u32 %s362_s26, 4  ;;  %s2761_s9 = smov [#allocation7]   ;;  %s373_s11 = int_to_ptr.vmem [resolvable:$true] %s372_s11 }
  0x3a   : > { %s2619_s8 = scalar_lea.vmem %s373_s11, 128  ;;  %s2624_s28 = sshll.u32 %s2761_s9, 4  ;;  %s2625_s28 = int_to_ptr.vmem [resolvable:$false] %s2624_s28 }
  0x3b   : > { %p2620_p10 = scmp.ne.s32.totalorder %s373_s11, %s2619_s8  ;;  %s2626_s29 = scalar_lea.vmem %s2625_s28, 256 }
  0x3c   : > { %p2627_p4 = scmp.lt.s32.totalorder %s373_s11, %s2625_s28  ;;  %p2628_p6 = scmp.lt.s32.totalorder %s2626_s29, %s2619_s8 }
  0x3d   : > { %p2622_p11 = pnand %p2620_p10, %p2580_p8 }
  0x3e   : > { %p2629_p12 = por %p2628_p6, %p2627_p4 }
  0x3f   : > { %p2623_p5 = pneg %p2622_p11 }
  0x41   : > { %p2630_p0 = pnand %p2629_p12, %p2623_p5 }
  0x43   : > { %2633 = shalt.err (!%p2630_p0)
}
  0x44   : > { %2177 = dma.hbm_to_vmem [thread:$0]  (!%p2939_p3), %s370_s30, 128, %s373_s11, %s359_s18  }
  0x45   : > { %381 = sbr.rel (%p2957_p9) target bundleno = 1998 (0x7ce), region = 60 }
  0x4a   : > { %s383_s0 = sand.u32 1, %s2734_s17  }
  0x4b   : > { %s2044_s25 = sshll.u32 %s383_s0, 3  ;;  %s384_s10 = scalar_lea.sflag [#allocation5], %s383_s0 }
  0x4c   : > { %s387_s24 = scalar_lea.vmem [#allocation4], %s2044_s25 }
  0x4d   : > { %2705 = dma.done.wait (%p2898_p7), %s384_s10, 128  }
  0x4e   : > { %2707 = vsyncadd (%p2898_p7), %s384_s10, 4294967168  ;;  %s393_s8 = scalar_lea.sflag [#allocation8], %s383_s0  ;;  %s396_s22 = scalar_lea.vmem [#allocation7], %s2044_s25 }
  0x4f   : > { %2709 = dma.done.wait (%p2898_p7), %s393_s8, 128  }
  0x50   : > { %2711 = vsyncadd (%p2898_p7), %s393_s8, 4294967168  ;;  %v443_v0 = vld [vmem:[%s387_s24] sm:$0xff]  ;;  %v2981_v1 = vld [vmem:[%s396_s22] sm:$0xff]  ;;  %s435_s18 = sand.u32 1, %s2722_s14   ;;  %v2762_v22 = vmov 0   ;;  %vm497_vm0 = vcmask 1043456  }
  0x51   : > { %v444_v2 = vunpack.c.l.bf16 %v443_v0  ;;  %v445_v3 = vunpack.c.h.bf16 %v443_v0  ;;  %v2984_v4 = vunpack.c.l.bf16 %v2981_v1  ;;  %v2987_v5 = vunpack.c.h.bf16 %v2981_v1  ;;  %s2996_s12 = sshll.u32 %s435_s18, 5  ;;  %536 = vmatprep.mubr.bf16.mxu0 %v2762_v22  ;;  %2278 = vset.pattern.permute.xlu0 %v2762_v22  ;;  %v487_v23 = vld [vmem:[%s3737_s3] sm:$0xff]  ;;  %p2087_p7 = scmp.ne.s32.totalorder %s2742_s19, 0 }
  0x52   : > { %593 = vmatprep.mubr.bf16.mxu1 %v2762_v22  ;;  %2279 = vset.pattern.permute.xlu1 %v2762_v22  ;;  %v546_v24 = vld [vmem:[%s3739_s5] sm:$0xff]  ;;  %v2052_v37 = vcombine.high %v2981_v1, %v2981_v1  ;;  %v2051_v38 = vcombine.low %v2981_v1, %v2981_v1  ;;  %vm493_vm1 = vcmask 64512   ;;  %vm856_vm2 = vcmask 60416   ;;  %s3083_s8 = scalar_lea.vmem [#allocation9], %s2996_s12 }
  0x53   : > { %3805 = vst [vmem:[#allocation21_spill] sm:$0xff] %v2984_v4  ;;  %3806 = vst [vmem:[#allocation22_spill] sm:$0xff] %v2987_v5  ;;  %v449_v6 = vadd.f32 %v445_v3, %v444_v2  ;;  %v468_v7 = vadd.f32 %v2987_v5, %v2984_v4  ;;  %v603_v25 = vld [vmem:[%s3741_s7] sm:$0xff] }
  0x54   : > { %v486_v43 = vld [vmem:[%s3736_s2] sm:$0xf]  ;;  %v618_v46 = vsel %vm497_vm0, %v2051_v38, 0 }
  0x55   : > { %450 = vadd.xlane.f32.xlu0 %v449_v6  ;;  %v545_v48 = vld [vmem:[%s3738_s4] sm:$0xf] }
  0x56   : > { %v602_v49 = vld [vmem:[%s3740_s6] sm:$0xf] }
  0x59   : > { %469 = vadd.xlane.f32.xlu0 %v468_v7 }
  0x6f   : > { %490 = vperm.xlu0 %2278, %v487_v23  }
  0xde   : > { %v451_v8 = vpop.xlane.xlu0 %450 }
  0xdf   : > { %v453_v9 = vmul.f32 0.00390625, %v451_v8 }
  0xe1   : > { %v454_v10 = vsub.f32 %v444_v2, %v453_v9  ;;  %v455_v11 = vsub.f32 %v445_v3, %v453_v9 }
  0xe2   : > { %v470_v12 = vpop.xlane.xlu0 %469 }
  0xe3   : > { %v456_v13 = vmul.f32 %v454_v10, %v454_v10  ;;  %v457_v14 = vmul.f32 %v455_v11, %v455_v11  ;;  %v471_v15 = vmul.f32 0.00390625, %v470_v12 }
  0xe5   : > { %v458_v16 = vadd.f32 %v457_v14, %v456_v13  ;;  %v472_v17 = vsub.f32 %v2984_v4, %v471_v15  ;;  %v473_v18 = vsub.f32 %v2987_v5, %v471_v15 }
  0xe7   : > { %459 = vadd.xlane.f32.xlu1 %v458_v16  ;;  %v474_v19 = vmul.f32 %v472_v17, %v472_v17  ;;  %v475_v20 = vmul.f32 %v473_v18, %v473_v18 }
  0xe9   : > { %v476_v21 = vadd.f32 %v475_v20, %v474_v19 }
  0xea   : > { %v491_v52 = vpop.permute.xlu0 %490 }
  0xeb   : > { %477 = vadd.xlane.f32.xlu1 %v476_v21 }
  0xfc   : > { %549 = vperm.xlu1 %2279, %v546_v24  }
 0x100   : > { %606 = vperm.xlu1 %2279, %v603_v25  }
 0x170   : > { %v460_v26 = vpop.xlane.xlu1 %459 }
 0x171   : > { %v461_v27 = vmul.f32 0.003921569, %v460_v26 }
 0x173   : > { %v462_v28 = vadd.f32 1e-05, %v461_v27 }
 0x174   : > { %v478_v29 = vpop.xlane.xlu1 %477 }
 0x175   : > { %2364 = vrsqrt.f32 %v462_v28  ;;  %v479_v30 = vmul.f32 0.003921569, %v478_v29 }
 0x177   : > { %v480_v31 = vadd.f32 1e-05, %v479_v30 }
 0x178   : > { %v550_v50 = vpop.permute.xlu1 %549 }
 0x179   : > { %2366 = vrsqrt.f32 %v480_v31 }
 0x17c   : > { %v607_v60 = vpop.permute.xlu1 %606 }
 0x182   : > { %v2365_v32 = vpop.eup %2364 }
 0x183   : > { %v465_v33 = vmul.f32 %v2365_v32, %v455_v11  ;;  %v464_v34 = vmul.f32 %v2365_v32, %v454_v10 }
 0x185   : > { %v467_v35 = vpack.c.bf16 %v465_v33, %v465_v33  ;;  %v466_v36 = vpack.c.bf16 %v464_v34, %v464_v34 }
 0x186   : > { %v2367_v39 = vpop.eup %2366 }
 0x187   : > { %2047 = vmatprep.subr.msk.bf16.mxu0 %vm497_vm0, %v467_v35  ;;  %v499_v40 = vsel %vm497_vm0, %v466_v36, 0  ;;  %v483_v41 = vmul.f32 %v2367_v39, %v473_v18  ;;  %v482_v42 = vmul.f32 %v2367_v39, %v472_v17 }
 0x188   : > { %519 = vmatpush1.bf16.msra.mxu0 %v499_v40 }
 0x189   : > { %v485_v44 = vpack.c.bf16 %v483_v41, %v483_v41  ;;  %v484_v45 = vpack.c.bf16 %v482_v42, %v482_v42  ;;  %2053 = vmatprep.subr.msk.bf16.mxu0 %vm497_vm0, %v2052_v37 }
 0x18b   : > { %2048 = vmatmul.mubr.msk.bf16.vlgmr.msra.gmra.mxu0 %vm493_vm1, %v486_v43  ;;  %2049 = vmatprep.subr.msk.bf16.mxu1 %vm497_vm0, %v485_v44  ;;  %v556_v47 = vsel %vm497_vm0, %v484_v45, 0 }
 0x18c   : > { %576 = vmatpush1.bf16.msra.mxu1 %v556_v47  ;;  %638 = vmatpush1.bf16.msra.mxu0 %v618_v46 }
 0x18d   : > { %655 = vmatprep.mubr.bf16.mxu0 %v2762_v22 }
 0x18f   : > { %2050 = vmatmul.mubr.msk.bf16.vlgmr.msra.gmra.mxu1 %vm493_vm1, %v545_v48 }
 0x193   : > { %2054 = vmatmul.mubr.msk.bf16.vlgmr.msra.gmra.mxu0 %vm493_vm1, %v602_v49 }
 0x24b   : > { %v538_v51 = vpop.f32.mrf.mxu0 }
 0x24c   : > { %v539_v54 = vadd.f32 %v538_v51, %v491_v52 }
 0x24d   : > { %v540_v53 = vpop.f32.mrf.mxu0 }
 0x24e   : > { %v541_v55 = vadd.f32 %v540_v53, %v491_v52 }
 0x24f   : > { %v542_v56 = vpop.f32.mrf.mxu0  ;;  %v595_v57 = vpop.f32.mrf.mxu1 }
 0x250   : > { %v2280_v58 = vpack.i.bf16 %v541_v55, %v539_v54  ;;  %v3034_v59 = vadd.f32 %v595_v57, %v550_v50 }
 0x251   : > { %v543_v61 = vpop.f32.mrf.mxu0  ;;  %v597_v62 = vpop.f32.mrf.mxu1 }
 0x252   : > { %2281 = vxpose.xlu1.b32.start.end [1/1] (short) %v2280_v58, 128  ;;  %v889_v63 = vpack.c.bf16 %v3034_v59, %v3034_v59  ;;  %v3038_v0 = vadd.f32 %v597_v62, %v550_v50 }
 0x253   : > { %v657_v1 = vpop.f32.mrf.mxu0  ;;  %v599_v2 = vpop.f32.mrf.mxu1 }
 0x254   : > { %v890_v3 = vpack.c.bf16 %v3038_v0, %v3038_v0  ;;  %v3042_v6 = vadd.f32 %v657_v1, %v607_v60 }
 0x255   : > { %v659_v7 = vpop.f32.mrf.mxu0  ;;  %v600_v8 = vpop.f32.mrf.mxu1 }
 0x256   : > { %3807 = vst [vmem:[#allocation23_spill] sm:$0xff] %v3042_v6  ;;  %v3044_v9 = vadd.f32 %v659_v7, %v607_v60 }
 0x257   : > { %v661_v11 = vpop.f32.mrf.mxu0 }
 0x258   : > { %v892_v12 = vpack.c.bf16 %v3044_v9, %v3044_v9 }
 0x259   : > { %v662_v13 = vpop.f32.mrf.mxu0 }
 0x2ce   : > { %v2282_v14 = vpop.trf.xlu1 }
 0x2cf   : > { %v2286_v15 = vunpack.i.h.bf16 %v2282_v14  ;;  %v2283_v16 = vunpack.i.l.bf16 %v2282_v14 }
 0x2d1   : > { %v2148_v17 = vpack.c.bf16 %v2286_v15, %v2286_v15  ;;  %v2132_v18 = vpack.c.bf16 %v2283_v16, %v2283_v16 }
 0x2d2   : > { %v2287_v19 = vpop.trf.xlu1 }
 0x2d3   : > { %873 = vst.msk [vmem:[#allocation2 + $0x40] sm:$0xf] %vm856_vm2, %v2148_v17  ;;  %857 = vst.msk [vmem:[#allocation2] sm:$0xf] %vm856_vm2, %v2132_v18  ;;  %v2291_v20 = vunpack.i.h.bf16 %v2287_v19  ;;  %v2288_v21 = vunpack.i.l.bf16 %v2287_v19 }
 0x2d5   : > { %v2149_v23 = vpack.c.bf16 %v2291_v20, %v2291_v20  ;;  %v2133_v24 = vpack.c.bf16 %v2288_v21, %v2288_v21 }
 0x2d6   : > { %v2292_v25 = vpop.trf.xlu1 }
 0x2d7   : > { %874 = vst.msk [vmem:[#allocation2 + $0x44] sm:$0xf] %vm856_vm2, %v2149_v23  ;;  %858 = vst.msk [vmem:[#allocation2 + $0x4] sm:$0xf] %vm856_vm2, %v2133_v24  ;;  %v2296_v26 = vunpack.i.h.bf16 %v2292_v25  ;;  %v2293_v27 = vunpack.i.l.bf16 %v2292_v25 }
 0x2d9   : > { %v2150_v28 = vpack.c.bf16 %v2296_v26, %v2296_v26  ;;  %v2134_v29 = vpack.c.bf16 %v2293_v27, %v2293_v27 }
 0x2da   : > { %v2297_v30 = vpop.trf.xlu1 }
 0x2db   : > { %875 = vst.msk [vmem:[#allocation2 + $0x48] sm:$0xf] %vm856_vm2, %v2150_v28  ;;  %859 = vst.msk [vmem:[#allocation2 + $0x8] sm:$0xf] %vm856_vm2, %v2134_v29  ;;  %v2301_v31 = vunpack.i.h.bf16 %v2297_v30  ;;  %v2298_v32 = vunpack.i.l.bf16 %v2297_v30 }
 0x2dd   : > { %v2151_v33 = vpack.c.bf16 %v2301_v31, %v2301_v31  ;;  %v2135_v34 = vpack.c.bf16 %v2298_v32, %v2298_v32 }
 0x2de   : > { %v2302_v35 = vpop.trf.xlu1 }
 0x2df   : > { %876 = vst.msk [vmem:[#allocation2 + $0x4c] sm:$0xf] %vm856_vm2, %v2151_v33  ;;  %860 = vst.msk [vmem:[#allocation2 + $0xc] sm:$0xf] %vm856_vm2, %v2135_v34  ;;  %v2306_v36 = vunpack.i.h.bf16 %v2302_v35  ;;  %v2303_v37 = vunpack.i.l.bf16 %v2302_v35 }
 0x2e1   : > { %v2152_v38 = vpack.c.bf16 %v2306_v36, %v2306_v36  ;;  %v2136_v39 = vpack.c.bf16 %v2303_v37, %v2303_v37 }
 0x2e2   : > { %v2307_v40 = vpop.trf.xlu1 }
 0x2e3   : > { %877 = vst.msk [vmem:[#allocation2 + $0x50] sm:$0xf] %vm856_vm2, %v2152_v38  ;;  %861 = vst.msk [vmem:[#allocation2 + $0x10] sm:$0xf] %vm856_vm2, %v2136_v39  ;;  %v2311_v41 = vunpack.i.h.bf16 %v2307_v40  ;;  %v2308_v42 = vunpack.i.l.bf16 %v2307_v40 }
 0x2e5   : > { %v2153_v43 = vpack.c.bf16 %v2311_v41, %v2311_v41  ;;  %v2137_v44 = vpack.c.bf16 %v2308_v42, %v2308_v42 }
 0x2e6   : > { %v2312_v45 = vpop.trf.xlu1 }
 0x2e7   : > { %878 = vst.msk [vmem:[#allocation2 + $0x54] sm:$0xf] %vm856_vm2, %v2153_v43  ;;  %862 = vst.msk [vmem:[#allocation2 + $0x14] sm:$0xf] %vm856_vm2, %v2137_v44  ;;  %v2316_v46 = vunpack.i.h.bf16 %v2312_v45  ;;  %v2313_v47 = vunpack.i.l.bf16 %v2312_v45 }
 0x2e9   : > { %v2154_v48 = vpack.c.bf16 %v2316_v46, %v2316_v46  ;;  %v2138_v49 = vpack.c.bf16 %v2313_v47, %v2313_v47 }
 0x2ea   : > { %v2317_v50 = vpop.trf.xlu1 }
 0x2eb   : > { %879 = vst.msk [vmem:[#allocation2 + $0x58] sm:$0xf] %vm856_vm2, %v2154_v48  ;;  %863 = vst.msk [vmem:[#allocation2 + $0x18] sm:$0xf] %vm856_vm2, %v2138_v49  ;;  %v2321_v51 = vunpack.i.h.bf16 %v2317_v50  ;;  %v2318_v52 = vunpack.i.l.bf16 %v2317_v50 }
 0x2ed   : > { %v2155_v53 = vpack.c.bf16 %v2321_v51, %v2321_v51  ;;  %v2139_v54 = vpack.c.bf16 %v2318_v52, %v2318_v52 }
 0x2ee   : > { %v2322_v55 = vpop.trf.xlu1 }
 0x2ef   : > { %880 = vst.msk [vmem:[#allocation2 + $0x5c] sm:$0xf] %vm856_vm2, %v2155_v53  ;;  %864 = vst.msk [vmem:[#allocation2 + $0x1c] sm:$0xf] %vm856_vm2, %v2139_v54  ;;  %v2326_v56 = vunpack.i.h.bf16 %v2322_v55  ;;  %v2323_v57 = vunpack.i.l.bf16 %v2322_v55 }
 0x2f1   : > { %v2156_v58 = vpack.c.bf16 %v2326_v56, %v2326_v56  ;;  %v2140_v60 = vpack.c.bf16 %v2323_v57, %v2323_v57 }
 0x2f2   : > { %v2327_v61 = vpop.trf.xlu1 }
 0x2f3   : > { %881 = vst.msk [vmem:[#allocation2 + $0x60] sm:$0xf] %vm856_vm2, %v2156_v58  ;;  %865 = vst.msk [vmem:[#allocation2 + $0x20] sm:$0xf] %vm856_vm2, %v2140_v60  ;;  %v2331_v62 = vunpack.i.h.bf16 %v2327_v61  ;;  %v2328_v1 = vunpack.i.l.bf16 %v2327_v61 }
 0x2f5   : > { %v2157_v2 = vpack.c.bf16 %v2331_v62, %v2331_v62  ;;  %v2141_v7 = vpack.c.bf16 %v2328_v1, %v2328_v1 }
 0x2f6   : > { %v2332_v8 = vpop.trf.xlu1 }
 0x2f7   : > { %882 = vst.msk [vmem:[#allocation2 + $0x64] sm:$0xf] %vm856_vm2, %v2157_v2  ;;  %866 = vst.msk [vmem:[#allocation2 + $0x24] sm:$0xf] %vm856_vm2, %v2141_v7  ;;  %v2336_v11 = vunpack.i.h.bf16 %v2332_v8  ;;  %v2333_v13 = vunpack.i.l.bf16 %v2332_v8 }
 0x2f9   : > { %v2158_v14 = vpack.c.bf16 %v2336_v11, %v2336_v11  ;;  %v2142_v15 = vpack.c.bf16 %v2333_v13, %v2333_v13 }
 0x2fa   : > { %v2337_v16 = vpop.trf.xlu1 }
 0x2fb   : > { %883 = vst.msk [vmem:[#allocation2 + $0x68] sm:$0xf] %vm856_vm2, %v2158_v14  ;;  %867 = vst.msk [vmem:[#allocation2 + $0x28] sm:$0xf] %vm856_vm2, %v2142_v15  ;;  %v2341_v17 = vunpack.i.h.bf16 %v2337_v16  ;;  %v2338_v18 = vunpack.i.l.bf16 %v2337_v16 }
 0x2fd   : > { %v2159_v19 = vpack.c.bf16 %v2341_v17, %v2341_v17  ;;  %v2143_v20 = vpack.c.bf16 %v2338_v18, %v2338_v18 }
 0x2fe   : > { %v2342_v21 = vpop.trf.xlu1 }
 0x2ff   : > { %884 = vst.msk [vmem:[#allocation2 + $0x6c] sm:$0xf] %vm856_vm2, %v2159_v19  ;;  %868 = vst.msk [vmem:[#allocation2 + $0x2c] sm:$0xf] %vm856_vm2, %v2143_v20  ;;  %v2346_v23 = vunpack.i.h.bf16 %v2342_v21  ;;  %v2343_v24 = vunpack.i.l.bf16 %v2342_v21 }
 0x301   : > { %v2160_v25 = vpack.c.bf16 %v2346_v23, %v2346_v23  ;;  %v2144_v26 = vpack.c.bf16 %v2343_v24, %v2343_v24 }
 0x302   : > { %v2347_v27 = vpop.trf.xlu1 }
 0x303   : > { %885 = vst.msk [vmem:[#allocation2 + $0x70] sm:$0xf] %vm856_vm2, %v2160_v25  ;;  %869 = vst.msk [vmem:[#allocation2 + $0x30] sm:$0xf] %vm856_vm2, %v2144_v26  ;;  %v2351_v28 = vunpack.i.h.bf16 %v2347_v27  ;;  %v2348_v29 = vunpack.i.l.bf16 %v2347_v27 }
 0x305   : > { %v2161_v30 = vpack.c.bf16 %v2351_v28, %v2351_v28  ;;  %v2145_v31 = vpack.c.bf16 %v2348_v29, %v2348_v29 }
 0x306   : > { %v2352_v32 = vpop.trf.xlu1 }
 0x307   : > { %886 = vst.msk [vmem:[#allocation2 + $0x74] sm:$0xf] %vm856_vm2, %v2161_v30  ;;  %870 = vst.msk [vmem:[#allocation2 + $0x34] sm:$0xf] %vm856_vm2, %v2145_v31  ;;  %v2356_v33 = vunpack.i.h.bf16 %v2352_v32  ;;  %v2353_v34 = vunpack.i.l.bf16 %v2352_v32 }
 0x309   : > { %v2162_v35 = vpack.c.bf16 %v2356_v33, %v2356_v33  ;;  %v2146_v36 = vpack.c.bf16 %v2353_v34, %v2353_v34 }
 0x30a   : > { %v2357_v37 = vpop.trf.xlu1 }
 0x30b   : > { %887 = vst.msk [vmem:[#allocation2 + $0x78] sm:$0xf] %vm856_vm2, %v2162_v35  ;;  %871 = vst.msk [vmem:[#allocation2 + $0x38] sm:$0xf] %vm856_vm2, %v2146_v36  ;;  %v2361_v38 = vunpack.i.h.bf16 %v2357_v37  ;;  %v2358_v39 = vunpack.i.l.bf16 %v2357_v37  ;;  %896 = sbr.rel (%p2087_p7) target bundleno = 786 (0x312), region = 72 }
 0x30d   : > { %v2163_v40 = vpack.c.bf16 %v2361_v38, %v2361_v38  ;;  %v2147_v41 = vpack.c.bf16 %v2358_v39, %v2358_v39 }
 0x30f   : > { %888 = vst.msk [vmem:[#allocation2 + $0x7c] sm:$0xf] %vm856_vm2, %v2163_v40  ;;  %872 = vst.msk [vmem:[#allocation2 + $0x3c] sm:$0xf] %vm856_vm2, %v2147_v41 }
 0x310   : > { %v2763_v42 = vmov 0.0  }
 0x311   : > { %897 = vst [vmem:[#allocation3] sm:$0xff] %v2763_v42  ;;  %898 = vst [vmem:[#allocation3 + $0x8] sm:$0xff] %v2763_v42 }
 0x312 PF: > { %2104 = vmatprep.subr.msk.bf16.mxu1 %vm497_vm0, %v890_v3  ;;  %v1066_v43 = vsel %vm497_vm0, %v889_v63, 0  ;;  %1103 = vmatprep.mubr.bf16.mxu1 %v2762_v22  ;;  %v2368_v44 = vld [vmem:[#allocation2] sm:$0xff]   ;;  %v2369_v0 = vld [vmem:[#allocation2 + $0x8] sm:$0xff]   ;;  %v2370_v59 = vld [vmem:[#allocation2 + $0x10] sm:$0xff]   ;;  %p2121_p3 = scmp.ne.s32.totalorder %s2742_s19, 5 }
 0x313   : > { %1086 = vmatpush1.bf16.msra.mxu1 %v1066_v43  ;;  %1808 = vmatprep.mubr.bf16.mxu0 %v892_v12  ;;  %v2371_v63 = vld [vmem:[#allocation2 + $0x18] sm:$0xff]   ;;  %v2372_v3 = vld [vmem:[#allocation2 + $0x20] sm:$0xff]   ;;  %v2373_v9 = vld [vmem:[#allocation2 + $0x28] sm:$0xff]   ;;  %s3870_s27 = sld [smem:[#allocation43_spill]] (!%p2121_p3) }
 0x314   : > { %v2374_v12 = vld [vmem:[#allocation2 + $0x30] sm:$0xff]   ;;  %v2376_v46 = vld [vmem:[#allocation2 + $0x40] sm:$0xff]   ;;  %v2377_v47 = vld [vmem:[#allocation2 + $0x48] sm:$0xff]   ;;  %s3871_s11 = sld [smem:[#allocation42_spill]] (!%p2121_p3) }
 0x315   : > { %v2378_v48 = vld [vmem:[#allocation2 + $0x50] sm:$0xff]   ;;  %v2379_v49 = vld [vmem:[#allocation2 + $0x58] sm:$0xff]   ;;  %v2380_v50 = vld [vmem:[#allocation2 + $0x60] sm:$0xff]  }
 0x316   : > { %2105 = vmatmul.mubr.msk.bf16.vlgmr.msra.gmra.mxu1 %vm493_vm1, %v2368_v44  ;;  %v2381_v51 = vld [vmem:[#allocation2 + $0x68] sm:$0xff]   ;;  %v2382_v52 = vld [vmem:[#allocation2 + $0x70] sm:$0xff]  }
 0x317   : > { %1113 = vmatprep.mubr.bf16.mxu1 %v2762_v22 }
 0x318   : > { %v2375_v45 = vld [vmem:[#allocation2 + $0x38] sm:$0xff]  }
 0x319   : > { %v2383_v53 = vld [vmem:[#allocation2 + $0x78] sm:$0xff]  }
 0x31e   : > { %2106 = vmatmul.mubr.msk.bf16.gmra.mxu1 %vm493_vm1, %v2369_v0 }
 0x31f   : > { %1123 = vmatprep.mubr.bf16.mxu1 %v2762_v22 }
 0x326   : > { %2107 = vmatmul.mubr.msk.bf16.gmra.mxu1 %vm493_vm1, %v2370_v59 }
 0x327   : > { %1133 = vmatprep.mubr.bf16.mxu1 %v2762_v22 }
 0x32e   : > { %2108 = vmatmul.mubr.msk.bf16.gmra.mxu1 %vm493_vm1, %v2371_v63 }
 0x32f   : > { %1143 = vmatprep.mubr.bf16.mxu1 %v2762_v22 }
 0x336   : > { %2109 = vmatmul.mubr.msk.bf16.gmra.mxu1 %vm493_vm1, %v2372_v3 }
 0x337   : > { %1153 = vmatprep.mubr.bf16.mxu1 %v2762_v22 }
 0x33e   : > { %2110 = vmatmul.mubr.msk.bf16.gmra.mxu1 %vm493_vm1, %v2373_v9 }
 0x33f   : > { %1163 = vmatprep.mubr.bf16.mxu1 %v2762_v22 }
 0x346   : > { %2111 = vmatmul.mubr.msk.bf16.gmra.mxu1 %vm493_vm1, %v2374_v12 }
 0x347   : > { %1173 = vmatprep.mubr.bf16.mxu1 %v2762_v22 }
 0x34e   : > { %2112 = vmatmul.mubr.msk.bf16.gmra.mxu1 %vm493_vm1, %v2375_v45 }
 0x34f   : > { %1183 = vmatprep.mubr.bf16.mxu1 %v2762_v22 }
 0x356   : > { %2113 = vmatmul.mubr.msk.bf16.gmra.mxu1 %vm493_vm1, %v2376_v46 }
 0x357   : > { %1193 = vmatprep.mubr.bf16.mxu1 %v2762_v22 }
 0x35e   : > { %2114 = vmatmul.mubr.msk.bf16.gmra.mxu1 %vm493_vm1, %v2377_v47 }
 0x35f   : > { %1203 = vmatprep.mubr.bf16.mxu1 %v2762_v22 }
 0x366   : > { %2115 = vmatmul.mubr.msk.bf16.gmra.mxu1 %vm493_vm1, %v2378_v48 }
 0x367   : > { %1213 = vmatprep.mubr.bf16.mxu1 %v2762_v22 }
 0x36e   : > { %2116 = vmatmul.mubr.msk.bf16.gmra.mxu1 %vm493_vm1, %v2379_v49 }
 0x36f   : > { %1223 = vmatprep.mubr.bf16.mxu1 %v2762_v22 }
 0x376   : > { %2117 = vmatmul.mubr.msk.bf16.gmra.mxu1 %vm493_vm1, %v2380_v50 }
 0x377   : > { %1233 = vmatprep.mubr.bf16.mxu1 %v2762_v22 }
 0x37e   : > { %2118 = vmatmul.mubr.msk.bf16.gmra.mxu1 %vm493_vm1, %v2381_v51 }
 0x37f   : > { %1243 = vmatprep.mubr.bf16.mxu1 %v2762_v22 }
 0x386   : > { %2119 = vmatmul.mubr.msk.bf16.gmra.mxu1 %vm493_vm1, %v2382_v52 }
 0x387   : > { %1253 = vmatprep.mubr.bf16.mxu1 %v2762_v22 }
 0x38e   : > { %2120 = vmatmul.mubr.msk.bf16.gmra.mxu1 %vm493_vm1, %v2383_v53 }
 0x3d6   : > { %v3129_v54 = vpop.f32.mrf.mxu1 }
 0x3d8   : > { %v3131_v55 = vpop.f32.mrf.mxu1 }
 0x3d9   : > { %v1264_v53 = vmax.f32 %v3129_v54, %v3131_v55 }
 0x3da   : > { %v3133_v56 = vpop.f32.mrf.mxu1 }
 0x3dc   : > { %v3135_v57 = vpop.f32.mrf.mxu1 }
 0x3dd   : > { %3808 = vst [vmem:[#allocation24_spill] sm:$0xff] %v3135_v57  ;;  %v1267_v46 = vmax.f32 %v3133_v56, %v3135_v57 }
 0x3de   : > { %v3137_v58 = vpop.f32.mrf.mxu1 }
 0x3e0   : > { %v3139_v60 = vpop.f32.mrf.mxu1 }
 0x3e1   : > { %v1270_v50 = vmax.f32 %v3137_v58, %v3139_v60 }
 0x3e2   : > { %v3141_v61 = vpop.f32.mrf.mxu1 }
 0x3e4   : > { %v3143_v62 = vpop.f32.mrf.mxu1 }
 0x3e5   : > { %v1273_v3 = vmax.f32 %v3141_v61, %v3143_v62 }
 0x3e6   : > { %v3145_v22 = vpop.f32.mrf.mxu1 }
 0x3e8   : > { %v3147_v1 = vpop.f32.mrf.mxu1 }
 0x3e9   : > { %v1276_v47 = vmax.f32 %v3145_v22, %v3147_v1 }
 0x3ea   : > { %v3149_v2 = vpop.f32.mrf.mxu1 }
 0x3ec   : > { %v3151_v7 = vpop.f32.mrf.mxu1 }
 0x3ed   : > { %v1279_v44 = vmax.f32 %v3149_v2, %v3151_v7 }
 0x3ee   : > { %v3153_v8 = vpop.f32.mrf.mxu1 }
 0x3f0   : > { %v3155_v11 = vpop.f32.mrf.mxu1 }
 0x3f1   : > { %v1282_v9 = vmax.f32 %v3153_v8, %v3155_v11 }
 0x3f2   : > { %v3157_v13 = vpop.f32.mrf.mxu1 }
 0x3f4   : > { %v3159_v14 = vpop.f32.mrf.mxu1 }
 0x3f5   : > { %v1285_v40 = vmax.f32 %v3157_v13, %v3159_v14 }
 0x3f6   : > { %v3161_v15 = vpop.f32.mrf.mxu1 }
 0x3f8   : > { %v3163_v16 = vpop.f32.mrf.mxu1 }
 0x3f9   : > { %v1288_v0 = vmax.f32 %v3161_v15, %v3163_v16 }
 0x3fa   : > { %v3165_v17 = vpop.f32.mrf.mxu1 }
 0x3fc   : > { %v3167_v18 = vpop.f32.mrf.mxu1 }
 0x3fd   : > { %v1291_v36 = vmax.f32 %v3165_v17, %v3167_v18 }
 0x3fe   : > { %v3169_v19 = vpop.f32.mrf.mxu1 }
 0x400   : > { %v3171_v20 = vpop.f32.mrf.mxu1 }
 0x401   : > { %v1294_v41 = vmax.f32 %v3169_v19, %v3171_v20 }
 0x402   : > { %v3173_v21 = vpop.f32.mrf.mxu1 }
 0x404   : > { %v3175_v23 = vpop.f32.mrf.mxu1 }
 0x405   : > { %v1297_v32 = vmax.f32 %v3173_v21, %v3175_v23 }
 0x406   : > { %v3177_v24 = vpop.f32.mrf.mxu1 }
 0x408   : > { %v3179_v25 = vpop.f32.mrf.mxu1 }
 0x409   : > { %v1300_v26 = vmax.f32 %v3177_v24, %v3179_v25 }
 0x40a   : > { %v3183_v27 = vpop.f32.mrf.mxu1 }
 0x40b   : > { %1301 = vmax.xlane.f32.xlu1 %v1300_v26 }
 0x40c   : > { %v3185_v28 = vpop.f32.mrf.mxu1 }
 0x40d   : > { %v1303_v29 = vmax.f32 %v3183_v27, %v3185_v28 }
 0x40e   : > { %v3189_v30 = vpop.f32.mrf.mxu1 }
 0x40f   : > { %1304 = vmax.xlane.f32.xlu1 %v1303_v29 }
 0x410   : > { %v3191_v31 = vpop.f32.mrf.mxu1 }
 0x411   : > { %v1306_v33 = vmax.f32 %v3189_v30, %v3191_v31 }
 0x412   : > { %v3197_v34 = vpop.f32.mrf.mxu1 }
 0x413   : > { %1298 = vmax.xlane.f32.xlu1 %v1297_v32  ;;  %1307 = vmax.xlane.f32.xlu0 %v1306_v33 }
 0x414   : > { %v3199_v35 = vpop.f32.mrf.mxu1 }
 0x415   : > { %v1309_v37 = vmax.f32 %v3197_v34, %v3199_v35 }
 0x416   : > { %v3205_v38 = vpop.f32.mrf.mxu1 }
 0x417   : > { %3809 = vst [vmem:[#allocation25_spill] sm:$0xff] %v3205_v38  ;;  %1292 = vmax.xlane.f32.xlu1 %v1291_v36  ;;  %1310 = vmax.xlane.f32.xlu0 %v1309_v37 }
 0x418   : > { %v3207_v39 = vpop.f32.mrf.mxu1 }
 0x419   : > { %3810 = vst [vmem:[#allocation26_spill] sm:$0xff] %v3207_v39 }
 0x41a   : > { %v3213_v42 = vpop.f32.mrf.mxu1 }
 0x41b   : > { %3811 = vst [vmem:[#allocation27_spill] sm:$0xff] %v3213_v42  ;;  %1286 = vmax.xlane.f32.xlu1 %v1285_v40  ;;  %1295 = vmax.xlane.f32.xlu0 %v1294_v41 }
 0x41c   : > { %v3215_v43 = vpop.f32.mrf.mxu1 }
 0x41d   : > { %3812 = vst [vmem:[#allocation28_spill] sm:$0xff] %v3215_v43 }
 0x41e   : > { %v3221_v59 = vpop.f32.mrf.mxu1 }
 0x41f   : > { %1280 = vmax.xlane.f32.xlu1 %v1279_v44  ;;  %1289 = vmax.xlane.f32.xlu0 %v1288_v0 }
 0x420   : > { %v3223_v63 = vpop.f32.mrf.mxu1 }
 0x422   : > { %v3229_v12 = vpop.f32.mrf.mxu1 }
 0x423   : > { %1274 = vmax.xlane.f32.xlu1 %v1273_v3  ;;  %1283 = vmax.xlane.f32.xlu0 %v1282_v9 }
 0x424   : > { %v3231_v45 = vpop.f32.mrf.mxu1 }
 0x426   : > { %v3237_v48 = vpop.f32.mrf.mxu1 }
 0x427   : > { %1268 = vmax.xlane.f32.xlu1 %v1267_v46  ;;  %1277 = vmax.xlane.f32.xlu0 %v1276_v47 }
 0x428   : > { %v3239_v49 = vpop.f32.mrf.mxu1 }
 0x42a   : > { %v3243_v51 = vpop.f32.mrf.mxu1 }
 0x42b   : > { %1271 = vmax.xlane.f32.xlu0 %v1270_v50 }
 0x42c   : > { %v3245_v52 = vpop.f32.mrf.mxu1 }
 0x42e   : > { %v3249_v26 = vpop.f32.mrf.mxu1 }
 0x42f   : > { %1265 = vmax.xlane.f32.xlu0 %v1264_v53 }
 0x430   : > { %v3251_v29 = vpop.f32.mrf.mxu1 }
 0x432   : > { %v3253_v32 = vpop.f32.mrf.mxu1 }
 0x434   : > { %v3255_v33 = vpop.f32.mrf.mxu1 }
 0x436   : > { %v3257_v36 = vpop.f32.mrf.mxu1 }
 0x437   : > { %3813 = vst [vmem:[#allocation29_spill] sm:$0xff] %v3257_v36 }
 0x438   : > { %v3259_v37 = vpop.f32.mrf.mxu1 }
 0x439   : > { %3814 = vst [vmem:[#allocation30_spill] sm:$0xff] %v3259_v37 }
 0x43a   : > { %v3261_v40 = vpop.f32.mrf.mxu1 }
 0x43b   : > { %3815 = vst [vmem:[#allocation31_spill] sm:$0xff] %v3261_v40 }
 0x43c   : > { %v3263_v41 = vpop.f32.mrf.mxu1 }
 0x43d   : > { %3816 = vst [vmem:[#allocation32_spill] sm:$0xff] %v3263_v41 }
 0x43e   : > { %v3265_v44 = vpop.f32.mrf.mxu1 }
 0x440   : > { %v3267_v0 = vpop.f32.mrf.mxu1 }
 0x441   : > { %3817 = vst [vmem:[#allocation33_spill] sm:$0xff] %v3267_v0  ;;  %v1342_v39 = vmax.f32 %v3265_v44, %v3267_v0 }
 0x442   : > { %v3269_v3 = vpop.f32.mrf.mxu1 }
 0x444   : > { %v3271_v9 = vpop.f32.mrf.mxu1 }
 0x445   : > { %3818 = vst [vmem:[#allocation34_spill] sm:$0xff] %v3271_v9 }
 0x446   : > { %v3273_v46 = vpop.f32.mrf.mxu1 }
 0x448   : > { %v3275_v47 = vpop.f32.mrf.mxu1 }
 0x449   : > { %3819 = vst [vmem:[#allocation35_spill] sm:$0xff] %v3275_v47  ;;  %v1348_v42 = vmax.f32 %v3273_v46, %v3275_v47  ;;  %v1345_v47 = vmax.f32 %v3269_v3, %v3271_v9 }
 0x44a   : > { %v3277_v50 = vpop.f32.mrf.mxu1 }
 0x44b   : > { %3820 = vst [vmem:[#allocation36_spill] sm:$0xff] %v3277_v50 }
 0x44c   : > { %v3279_v53 = vpop.f32.mrf.mxu1 }
 0x44d   : > { %3821 = vst [vmem:[#allocation37_spill] sm:$0xff] %v3279_v53  ;;  %v1351_v57 = vmax.f32 %v3277_v50, %v3279_v53 }
 0x44e   : > { %v3281_v10 = vpop.f32.mrf.mxu1 }
 0x450   : > { %v3283_v5 = vpop.f32.mrf.mxu1 }
 0x451   : > { %v1354_v4 = vmax.f32 %v3281_v10, %v3283_v5 }
 0x452   : > { %v3287_v6 = vpop.f32.mrf.mxu1 }
 0x453   : > { %1355 = vmax.xlane.f32.xlu0 %v1354_v4  ;;  %v1336_v4 = vmax.f32 %v3257_v36, %v3259_v37 }
 0x454   : > { %v3291_v43 = vpop.f32.mrf.mxu1 }
 0x455   : > { %3822 = vst [vmem:[#allocation38_spill] sm:$0xff] %v3291_v43  ;;  %v1357_v38 = vmax.f32 %v3287_v6, %v3291_v43 }
 0x457   : > { %1349 = vmax.xlane.f32.xlu0 %v1348_v42  ;;  %1358 = vmax.xlane.f32.xlu1 %v1357_v38  ;;  %v1339_v42 = vmax.f32 %v3261_v40, %v3263_v41 }
 0x45b   : > { %1343 = vmax.xlane.f32.xlu0 %v1342_v39  ;;  %1352 = vmax.xlane.f32.xlu1 %v1351_v57 }
 0x45f   : > { %1337 = vmax.xlane.f32.xlu0 %v1336_v4  ;;  %1346 = vmax.xlane.f32.xlu1 %v1345_v47 }
 0x463   : > { %1340 = vmax.xlane.f32.xlu1 %v1339_v42 }
 0x494   : > { %v1302_v38 = vpop.xlane.xlu1 %1301 }
 0x495   : > { %v1384_v37 = vsub.f32 %v3177_v24, %v1302_v38  ;;  %v1385_v4 = vsub.f32 %v3179_v25, %v1302_v38 }
 0x498   : > { %v1305_v47 = vpop.xlane.xlu1 %1304 }
 0x49c   : > { %v1308_v43 = vpop.xlane.xlu0 %1307  ;;  %v1299_v24 = vpop.xlane.xlu1 %1298 }
 0x49d   : > { %v1388_v0 = vsub.f32 %v3189_v30, %v1308_v43  ;;  %v1389_v53 = vsub.f32 %v3191_v31, %v1308_v43  ;;  %v1472_v30 = vmul.f32 1.442695, %v1384_v37  ;;  %v1386_v31 = vsub.f32 %v3183_v27, %v1305_v47 }
 0x49e   : > { %v1474_v43 = vmul.f32 1.442695, %v1385_v4  ;;  %v1382_v37 = vsub.f32 %v3173_v21, %v1299_v24  ;;  %v1383_v27 = vsub.f32 %v3175_v23, %v1299_v24 }
 0x49f   : > { %v1480_v39 = vmul.f32 1.442695, %v1388_v0  ;;  %v1482_v57 = vmul.f32 1.442695, %v1389_v53  ;;  %v1387_v0 = vsub.f32 %v3185_v28, %v1305_v47 }
 0x4a0   : > { %v1311_v50 = vpop.xlane.xlu0 %1310  ;;  %v1293_v28 = vpop.xlane.xlu1 %1292 }
 0x4a1   : > { %v1390_v36 = vsub.f32 %v3197_v34, %v1311_v50  ;;  %v1391_v9 = vsub.f32 %v3199_v35, %v1311_v50  ;;  %2384 = vpow2.f32 %v1480_v39  ;;  %v1476_v34 = vmul.f32 1.442695, %v1386_v31 }
 0x4a2   : > { %2386 = vpow2.f32 %v1482_v57  ;;  %v1478_v35 = vmul.f32 1.442695, %v1387_v0 }
 0x4a3   : > { %v1484_v42 = vmul.f32 1.442695, %v1390_v36  ;;  %v1486_v41 = vmul.f32 1.442695, %v1391_v9 }
 0x4a4   : > { %v1296_v40 = vpop.xlane.xlu0 %1295  ;;  %v1287_v23 = vpop.xlane.xlu1 %1286 }
 0x4a5   : > { %2388 = vpow2.f32 %v1484_v42  ;;  %v1380_v25 = vsub.f32 %v3169_v19, %v1296_v40  ;;  %v1381_v36 = vsub.f32 %v3171_v20, %v1296_v40  ;;  %v1468_v19 = vmul.f32 1.442695, %v1382_v37 }
 0x4a6   : > { %2390 = vpow2.f32 %v1486_v41  ;;  %v1470_v20 = vmul.f32 1.442695, %v1383_v27  ;;  %v1378_v42 = vsub.f32 %v3165_v17, %v1293_v28 }
 0x4a7   : > { %2392 = vpow2.f32 %v1472_v30  ;;  %v1464_v9 = vmul.f32 1.442695, %v1380_v25  ;;  %v1466_v53 = vmul.f32 1.442695, %v1381_v36 }
 0x4a8   : > { %2394 = vpow2.f32 %v1474_v43  ;;  %v1290_v50 = vpop.xlane.xlu0 %1289  ;;  %v1460_v25 = vmul.f32 1.442695, %v1378_v42 }
 0x4a9   : > { %2396 = vpow2.f32 %v1476_v34  ;;  %v1376_v57 = vsub.f32 %v3161_v15, %v1290_v50  ;;  %v1377_v40 = vsub.f32 %v3163_v16, %v1290_v50  ;;  %v1330_v15 = vmax.f32 %v3249_v26, %v3251_v29 }
 0x4aa   : > { %2398 = vpow2.f32 %v1478_v35  ;;  %v1379_v16 = vsub.f32 %v3167_v18, %v1293_v28  ;;  %v1333_v35 = vmax.f32 %v3253_v32, %v3255_v33  ;;  %v1281_v18 = vpop.xlane.xlu1 %1280  ;;  %v1374_v28 = vsub.f32 %v3157_v13, %v1287_v23 }
 0x4ab   : > { %2400 = vpow2.f32 %v1464_v9  ;;  %v1456_v30 = vmul.f32 1.442695, %v1376_v57  ;;  %v1458_v43 = vmul.f32 1.442695, %v1377_v40 }
 0x4ac   : > { %v1284_v41 = vpop.xlane.xlu0 %1283  ;;  %2402 = vpow2.f32 %v1466_v53  ;;  %v1462_v50 = vmul.f32 1.442695, %v1379_v16  ;;  %v1375_v53 = vsub.f32 %v3159_v14, %v1287_v23  ;;  %v1370_v23 = vsub.f32 %v3149_v2, %v1281_v18 }
 0x4ad   : > { %2404 = vpow2.f32 %v1468_v19  ;;  %v1372_v17 = vsub.f32 %v3153_v8, %v1284_v41  ;;  %v1373_v37 = vsub.f32 %v3155_v11, %v1284_v41 }
 0x4ae   : > { %v3317_v38 = vpop.eup %2384  ;;  %2406 = vpow2.f32 %v1470_v20  ;;  %v1324_v20 = vmax.f32 %v3237_v48, %v3239_v49  ;;  %v1454_v42 = vmul.f32 1.442695, %v1375_v53 }
 0x4af   : > { %v3319_v39 = vpop.eup %2386  ;;  %2408 = vpow2.f32 %v1456_v30  ;;  %v1448_v19 = vmul.f32 1.442695, %v1372_v17  ;;  %v1450_v41 = vmul.f32 1.442695, %v1373_v37  ;;  %v1275_v30 = vpop.xlane.xlu1 %1274  ;;  %v1444_v17 = vmul.f32 1.442695, %v1370_v23 }
 0x4b0   : > { %v1594_v21 = vadd.f32 %v3319_v39, %v3317_v38  ;;  %v1278_v0 = vpop.xlane.xlu0 %1277  ;;  %2410 = vpow2.f32 %v1458_v43  ;;  %v1318_v37 = vmax.f32 %v3221_v59, %v3223_v63 }
 0x4b1   : > { %2412 = vpow2.f32 %v1460_v25  ;;  %v1368_v57 = vsub.f32 %v3145_v22, %v1278_v0  ;;  %v1369_v40 = vsub.f32 %v3147_v1, %v1278_v0  ;;  %v1371_v22 = vsub.f32 %v3151_v7, %v1281_v18 }
 0x4b2   : > { %v3325_v4 = vpop.eup %2388  ;;  %1595 = vadd.xlane.f32.xlu0 %v1594_v21  ;;  %2414 = vpow2.f32 %v1462_v50  ;;  %v1452_v21 = vmul.f32 1.442695, %v1374_v28  ;;  %v1327_v1 = vmax.f32 %v3243_v51, %v3245_v52  ;;  %v1367_v50 = vsub.f32 %v3143_v62, %v1275_v30 }
 0x4b3   : > { %v3327_v47 = vpop.eup %2390  ;;  %2416 = vpow2.f32 %v1448_v19  ;;  %v1442_v0 = vmul.f32 1.442695, %v1369_v40  ;;  %v1269_v28 = vpop.xlane.xlu1 %1268 }
 0x4b4   : > { %v3332_v31 = vpop.eup %2392  ;;  %v1597_v24 = vadd.f32 %v3327_v47, %v3325_v4  ;;  %v1272_v8 = vpop.xlane.xlu0 %1271  ;;  %2418 = vpow2.f32 %v1450_v41  ;;  %v1321_v41 = vmax.f32 %v3229_v12, %v3231_v45 }
 0x4b5   : > { %v3337_v34 = vpop.eup %2394  ;;  %v1364_v16 = vsub.f32 %v3137_v58, %v1272_v8  ;;  %2420 = vpow2.f32 %v1452_v21  ;;  %v1446_v58 = vmul.f32 1.442695, %v1371_v22 }
 0x4b6   : > { %1331 = vmax.xlane.f32.xlu0 %v1330_v15  ;;  %1598 = vadd.xlane.f32.xlu1 %v1597_v24  ;;  %v3342_v36 = vpop.eup %2396  ;;  %v1588_v9 = vadd.f32 %v3337_v34, %v3332_v31  ;;  %v1440_v15 = vmul.f32 1.442695, %v1368_v57  ;;  %v1365_v24 = vsub.f32 %v3139_v60, %v1272_v8  ;;  %2422 = vpow2.f32 %v1454_v42 }
 0x4b7   : > { %v3347_v27 = vpop.eup %2398  ;;  %v1432_v18 = vmul.f32 1.442695, %v1364_v16  ;;  %v1438_v57 = vmul.f32 1.442695, %v1367_v50  ;;  %v3825_v16 = vld [vmem:[#allocation25_spill] sm:$0xff]  ;;  %v3827_v50 = vld [vmem:[#allocation27_spill] sm:$0xff] }
 0x4b8   : > { %v3354_v11 = vpop.eup %2400  ;;  %v1591_v13 = vadd.f32 %v3347_v27, %v3342_v36  ;;  %v1266_v2 = vpop.xlane.xlu0 %1265  ;;  %2424 = vpow2.f32 %v1440_v15  ;;  %v1434_v53 = vmul.f32 1.442695, %v1365_v24  ;;  %v3824_v15 = vld [vmem:[#allocation26_spill] sm:$0xff] }
 0x4b9   : > { %v3359_v14 = vpop.eup %2402  ;;  %v1360_v60 = vsub.f32 %v3129_v54, %v1266_v2  ;;  %2426 = vpow2.f32 %v1442_v0  ;;  %v1362_v54 = vsub.f32 %v3133_v56, %v1269_v28 }
 0x4ba   : > { %1589 = vadd.xlane.f32.xlu0 %v1588_v9  ;;  %1334 = vmax.xlane.f32.xlu1 %v1333_v35  ;;  %v3366_v43 = vpop.eup %2404  ;;  %v1582_v7 = vadd.f32 %v3359_v14, %v3354_v11  ;;  %v1366_v35 = vsub.f32 %v3141_v61, %v1275_v30  ;;  %v1361_v61 = vsub.f32 %v3131_v55, %v1266_v2  ;;  %2428 = vpow2.f32 %v1444_v17  ;;  %v3823_v55 = vld [vmem:[#allocation24_spill] sm:$0xff] }
 0x4bb   : > { %v3371_v25 = vpop.eup %2406  ;;  %2430 = vpow2.f32 %v1446_v58  ;;  %v1428_v56 = vmul.f32 1.442695, %v1362_v54  ;;  %v3826_v58 = vld [vmem:[#allocation28_spill] sm:$0xff] }
 0x4bc   : > { %v3378_v9 = vpop.eup %2408  ;;  %v1585_v8 = vadd.f32 %v3371_v25, %v3366_v43  ;;  %v1436_v19 = vmul.f32 1.442695, %v1366_v35  ;;  %2432 = vpow2.f32 %v1432_v18  ;;  %v1426_v21 = vmul.f32 1.442695, %v1361_v61 }
 0x4bd   : > { %v3383_v62 = vpop.eup %2410  ;;  %2434 = vpow2.f32 %v1434_v53  ;;  %v1315_v18 = vmax.f32 %v3827_v50, %v3826_v58 }
 0x4be   : > { %1325 = vmax.xlane.f32.xlu0 %v1324_v20  ;;  %1592 = vadd.xlane.f32.xlu1 %v1591_v13  ;;  %v1424_v20 = vmul.f32 1.442695, %v1360_v60  ;;  %v3388_v40 = vpop.eup %2412  ;;  %v1363_v13 = vsub.f32 %v3823_v55, %v1269_v28  ;;  %v1576_v23 = vadd.f32 %v3383_v62, %v3378_v9  ;;  %2436 = vpow2.f32 %v1436_v19 }
 0x4bf   : > { %v3393_v42 = vpop.eup %2414  ;;  %2438 = vpow2.f32 %v1438_v57 }
 0x4c0   : > { %2440 = vpow2.f32 %v1424_v20  ;;  %v3395_v22 = vpop.eup %2416  ;;  %v1430_v30 = vmul.f32 1.442695, %v1363_v13  ;;  %v1579_v0 = vadd.f32 %v3393_v42, %v3388_v40 }
 0x4c1   : > { %2442 = vpow2.f32 %v1426_v21  ;;  %v3401_v24 = vpop.eup %2418 }
 0x4c2   : > { %1583 = vadd.xlane.f32.xlu0 %v1582_v7  ;;  %1328 = vmax.xlane.f32.xlu1 %v1327_v1  ;;  %v1312_v1 = vmax.f32 %v3825_v16, %v3824_v15  ;;  %v3403_v2 = vpop.eup %2420  ;;  %2444 = vpow2.f32 %v1428_v56  ;;  %v1570_v35 = vadd.f32 %v3401_v24, %v3395_v22 }
 0x4c3   : > { %v3405_v7 = vpop.eup %2422  ;;  %2446 = vpow2.f32 %v1430_v30 }
 0x4c5   : > { %v3407_v17 = vpop.eup %2424 }
 0x4c6   : > { %1319 = vmax.xlane.f32.xlu0 %v1318_v37  ;;  %1586 = vadd.xlane.f32.xlu1 %v1585_v8  ;;  %v3413_v60 = vpop.eup %2426  ;;  %v1573_v8 = vadd.f32 %v3405_v7, %v3403_v2 }
 0x4c7   : > { %v3415_v37 = vpop.eup %2428  ;;  %v1564_v61 = vadd.f32 %v3413_v60, %v3407_v17 }
 0x4c8   : > { %v3417_v28 = vpop.eup %2430 }
 0x4c9   : > { %v3419_v53 = vpop.eup %2432  ;;  %v1567_v55 = vadd.f32 %v3417_v28, %v3415_v37 }
 0x4ca   : > { %1577 = vadd.xlane.f32.xlu0 %v1576_v23  ;;  %1322 = vmax.xlane.f32.xlu1 %v1321_v41  ;;  %3828 = vst [vmem:[#allocation24_spill] sm:$0xff] %v3419_v53  ;;  %v3425_v19 = vpop.eup %2434 }
 0x4cb   : > { %3829 = vst [vmem:[#allocation26_spill] sm:$0xff] %v3425_v19  ;;  %v3427_v57 = vpop.eup %2436  ;;  %v1558_v41 = vadd.f32 %v3425_v19, %v3419_v53 }
 0x4cc   : > { %3830 = vst [vmem:[#allocation25_spill] sm:$0xff] %v3427_v57  ;;  %v3429_v54 = vpop.eup %2438 }
 0x4cd   : > { %v3431_v20 = vpop.eup %2440 }
 0x4ce   : > { %1313 = vmax.xlane.f32.xlu0 %v1312_v1  ;;  %1580 = vadd.xlane.f32.xlu1 %v1579_v0  ;;  %3831 = vst [vmem:[#allocation28_spill] sm:$0xff] %v3431_v20  ;;  %v3437_v13 = vpop.eup %2442  ;;  %v1561_v0 = vadd.f32 %v3429_v54, %v3427_v57 }
 0x4cf   : > { %3832 = vst [vmem:[#allocation27_spill] sm:$0xff] %v3437_v13  ;;  %v3441_v30 = vpop.eup %2444  ;;  %v1552_v1 = vadd.f32 %v3437_v13, %v3431_v20  ;;  %v3836_v20 = vld [vmem:[#allocation38_spill] sm:$0xff] }
 0x4d0   : > { %3833 = vst [vmem:[#allocation39_spill] sm:$0xff] %v3441_v30 }
 0x4d2   : > { %1571 = vadd.xlane.f32.xlu0 %v1570_v35  ;;  %1316 = vmax.xlane.f32.xlu1 %v1315_v18  ;;  %v3447_v35 = vpop.eup %2446 }
 0x4d3   : > { %3834 = vst [vmem:[#allocation40_spill] sm:$0xff] %v3447_v35  ;;  %v1555_v53 = vadd.f32 %v3447_v35, %v3441_v30  ;;  %v3841_v35 = vld [vmem:[#allocation30_spill] sm:$0xff] }
 0x4d6   : > { %1565 = vadd.xlane.f32.xlu0 %v1564_v61  ;;  %1574 = vadd.xlane.f32.xlu1 %v1573_v8 }
 0x4da   : > { %1559 = vadd.xlane.f32.xlu0 %v1558_v41  ;;  %1568 = vadd.xlane.f32.xlu1 %v1567_v55 }
 0x4dc   : > { %v1356_v21 = vpop.xlane.xlu0 %1355 }
 0x4dd   : > { %v1420_v23 = vsub.f32 %v3281_v10, %v1356_v21  ;;  %v1421_v56 = vsub.f32 %v3283_v5, %v1356_v21  ;;  %v3835_v5 = vld [vmem:[#allocation35_spill] sm:$0xff] }
 0x4de   : > { %1553 = vadd.xlane.f32.xlu0 %v1552_v1  ;;  %1562 = vadd.xlane.f32.xlu1 %v1561_v0 }
 0x4df   : > { %v1544_v18 = vmul.f32 1.442695, %v1420_v23  ;;  %v1546_v61 = vmul.f32 1.442695, %v1421_v56 }
 0x4e0   : > { %v1350_v8 = vpop.xlane.xlu0 %1349  ;;  %v1359_v41 = vpop.xlane.xlu1 %1358 }
 0x4e1   : > { %2448 = vpow2.f32 %v1544_v18  ;;  %v1416_v10 = vsub.f32 %v3273_v46, %v1350_v8  ;;  %v1417_v55 = vsub.f32 %v3835_v5, %v1350_v8  ;;  %v1422_v21 = vsub.f32 %v3287_v6, %v1359_v41  ;;  %v3837_v18 = vld [vmem:[#allocation33_spill] sm:$0xff]  ;;  %v3838_v5 = vld [vmem:[#allocation36_spill] sm:$0xff] }
 0x4e2   : > { %2450 = vpow2.f32 %v1546_v61  ;;  %v1423_v13 = vsub.f32 %v3836_v20, %v1359_v41  ;;  %1556 = vadd.xlane.f32.xlu1 %v1555_v53  ;;  %v3839_v61 = vld [vmem:[#allocation37_spill] sm:$0xff] }
 0x4e3   : > { %v1536_v57 = vmul.f32 1.442695, %v1416_v10  ;;  %v1538_v23 = vmul.f32 1.442695, %v1417_v55  ;;  %v1548_v56 = vmul.f32 1.442695, %v1422_v21 }
 0x4e4   : > { %v1550_v1 = vmul.f32 1.442695, %v1423_v13  ;;  %v1344_v0 = vpop.xlane.xlu0 %1343  ;;  %v1353_v19 = vpop.xlane.xlu1 %1352  ;;  %v3840_v21 = vld [vmem:[#allocation29_spill] sm:$0xff] }
 0x4e5   : > { %2452 = vpow2.f32 %v1536_v57  ;;  %v1412_v46 = vsub.f32 %v3265_v44, %v1344_v0  ;;  %v1413_v8 = vsub.f32 %v3837_v18, %v1344_v0  ;;  %v1418_v6 = vsub.f32 %v3838_v5, %v1353_v19  ;;  %v3842_v18 = vld [vmem:[#allocation34_spill] sm:$0xff]  ;;  %v3843_v5 = vld [vmem:[#allocation31_spill] sm:$0xff] }
 0x4e6   : > { %2454 = vpow2.f32 %v1538_v23  ;;  %v1419_v20 = vsub.f32 %v3839_v61, %v1353_v19  ;;  %v3844_v61 = vld [vmem:[#allocation32_spill] sm:$0xff] }
 0x4e7   : > { %2456 = vpow2.f32 %v1548_v56  ;;  %v1528_v41 = vmul.f32 1.442695, %v1412_v46  ;;  %v1530_v30 = vmul.f32 1.442695, %v1413_v8  ;;  %v1540_v10 = vmul.f32 1.442695, %v1418_v6 }
 0x4e8   : > { %2458 = vpow2.f32 %v1550_v1  ;;  %v1542_v55 = vmul.f32 1.442695, %v1419_v20  ;;  %v1338_v13 = vpop.xlane.xlu0 %1337  ;;  %v1347_v53 = vpop.xlane.xlu1 %1346 }
 0x4e9   : > { %2460 = vpow2.f32 %v1528_v41  ;;  %v1408_v57 = vsub.f32 %v3840_v21, %v1338_v13  ;;  %v1409_v44 = vsub.f32 %v3841_v35, %v1338_v13  ;;  %v1414_v0 = vsub.f32 %v3269_v3, %v1347_v53 }
 0x4ea   : > { %2462 = vpow2.f32 %v1530_v30  ;;  %v1415_v23 = vsub.f32 %v3842_v18, %v1347_v53 }
 0x4eb   : > { %2464 = vpow2.f32 %v1540_v10  ;;  %v1520_v19 = vmul.f32 1.442695, %v1408_v57  ;;  %v1522_v56 = vmul.f32 1.442695, %v1409_v44  ;;  %v1532_v46 = vmul.f32 1.442695, %v1414_v0 }
 0x4ec   : > { %2466 = vpow2.f32 %v1542_v55  ;;  %v1534_v8 = vmul.f32 1.442695, %v1415_v23  ;;  %v1341_v1 = vpop.xlane.xlu1 %1340 }
 0x4ed   : > { %2468 = vpow2.f32 %v1520_v19  ;;  %v1410_v6 = vsub.f32 %v3843_v5, %v1341_v1  ;;  %v1411_v20 = vsub.f32 %v3844_v61, %v1341_v1 }
 0x4ee   : > { %v3465_v41 = vpop.eup %2448  ;;  %2470 = vpow2.f32 %v1522_v56 }
 0x4ef   : > { %v3467_v35 = vpop.eup %2450  ;;  %2472 = vpow2.f32 %v1532_v46  ;;  %v1524_v3 = vmul.f32 1.442695, %v1410_v6  ;;  %v1526_v30 = vmul.f32 1.442695, %v1411_v20 }
 0x4f0   : > { %2474 = vpow2.f32 %v1534_v8  ;;  %v1642_v10 = vadd.f32 %v3467_v35, %v3465_v41 }
 0x4f1   : > { %2476 = vpow2.f32 %v1524_v3 }
 0x4f2   : > { %v3471_v55 = vpop.eup %2452  ;;  %2478 = vpow2.f32 %v1526_v30  ;;  %1643 = vadd.xlane.f32.xlu0 %v1642_v10 }
 0x4f3   : > { %v3473_v13 = vpop.eup %2454 }
 0x4f4   : > { %v3475_v53 = vpop.eup %2456  ;;  %v1636_v21 = vadd.f32 %v3473_v13, %v3471_v55 }
 0x4f5   : > { %v3479_v57 = vpop.eup %2458 }
 0x4f6   : > { %v3481_v44 = vpop.eup %2460  ;;  %1637 = vadd.xlane.f32.xlu0 %v1636_v21  ;;  %v1645_v0 = vadd.f32 %v3479_v57, %v3475_v53 }
 0x4f7   : > { %3845 = vst [vmem:[#allocation35_spill] sm:$0xff] %v3481_v44  ;;  %v3485_v18 = vpop.eup %2462 }
 0x4f8   : > { %3846 = vst [vmem:[#allocation38_spill] sm:$0xff] %v3485_v18  ;;  %v3487_v23 = vpop.eup %2464  ;;  %1646 = vadd.xlane.f32.xlu1 %v1645_v0  ;;  %v1630_v19 = vadd.f32 %v3485_v18, %v3481_v44 }
 0x4f9   : > { %v3491_v56 = vpop.eup %2466 }
 0x4fa   : > { %v3493_v46 = vpop.eup %2468  ;;  %1631 = vadd.xlane.f32.xlu0 %v1630_v19  ;;  %v1639_v8 = vadd.f32 %v3491_v56, %v3487_v23 }
 0x4fb   : > { %3847 = vst [vmem:[#allocation33_spill] sm:$0xff] %v3493_v46  ;;  %v3497_v1 = vpop.eup %2470 }
 0x4fc   : > { %3848 = vst [vmem:[#allocation36_spill] sm:$0xff] %v3497_v1  ;;  %v3499_v5 = vpop.eup %2472  ;;  %1640 = vadd.xlane.f32.xlu1 %v1639_v8  ;;  %v1624_v6 = vadd.f32 %v3497_v1, %v3493_v46 }
 0x4fd   : > { %3849 = vst [vmem:[#allocation37_spill] sm:$0xff] %v3499_v5  ;;  %v3503_v61 = vpop.eup %2474 }
 0x4fe   : > { %v3505_v20 = vpop.eup %2476  ;;  %1625 = vadd.xlane.f32.xlu0 %v1624_v6  ;;  %v1633_v3 = vadd.f32 %v3503_v61, %v3499_v5 }
 0x4ff   : > { %3850 = vst [vmem:[#allocation29_spill] sm:$0xff] %v3505_v20  ;;  %v3509_v30 = vpop.eup %2478 }
 0x500   : > { %3851 = vst [vmem:[#allocation30_spill] sm:$0xff] %v3509_v30  ;;  %1634 = vadd.xlane.f32.xlu1 %v1633_v3  ;;  %v1627_v10 = vadd.f32 %v3509_v30, %v3505_v20 }
 0x504   : > { %1628 = vadd.xlane.f32.xlu1 %v1627_v10 }
 0x53b   : > { %v1596_v21 = vpop.xlane.xlu0 %1595 }
 0x53c   : > { %2480 = vrcp.f32 %v1596_v21 }
 0x53f   : > { %v1332_v0 = vpop.xlane.xlu0 %1331  ;;  %v1599_v19 = vpop.xlane.xlu1 %1598 }
 0x540   : > { %v1404_v8 = vsub.f32 %v3249_v26, %v1332_v0  ;;  %v1405_v46 = vsub.f32 %v3251_v29, %v1332_v0  ;;  %2482 = vrcp.f32 %v1599_v19 }
 0x542   : > { %v1512_v6 = vmul.f32 1.442695, %v1404_v8  ;;  %v1514_v1 = vmul.f32 1.442695, %v1405_v46 }
 0x543   : > { %v1590_v44 = vpop.xlane.xlu0 %1589  ;;  %v1335_v5 = vpop.xlane.xlu1 %1334 }
 0x544   : > { %2484 = vpow2.f32 %v1512_v6  ;;  %v1406_v3 = vsub.f32 %v3253_v32, %v1335_v5  ;;  %v1407_v18 = vsub.f32 %v3255_v33, %v1335_v5 }
 0x545   : > { %2486 = vpow2.f32 %v1514_v1 }
 0x546   : > { %v1516_v10 = vmul.f32 1.442695, %v1406_v3  ;;  %v1518_v20 = vmul.f32 1.442695, %v1407_v18  ;;  %2488 = vrcp.f32 %v1590_v44 }
 0x547   : > { %v1326_v21 = vpop.xlane.xlu0 %1325  ;;  %v1593_v30 = vpop.xlane.xlu1 %1592 }
 0x548   : > { %2490 = vpow2.f32 %v1516_v10  ;;  %v1400_v26 = vsub.f32 %v3237_v48, %v1326_v21  ;;  %v1401_v29 = vsub.f32 %v3239_v49, %v1326_v21 }
 0x549   : > { %2492 = vpow2.f32 %v1518_v20  ;;  %v2481_v19 = vpop.eup %2480 }
 0x54a   : > { %v1504_v46 = vmul.f32 1.442695, %v1400_v26  ;;  %v1506_v0 = vmul.f32 1.442695, %v1401_v29  ;;  %2494 = vrcp.f32 %v1593_v30  ;;  %v1709_v48 = vmul.f32 %v2481_v19, %v3319_v39 }
 0x54b   : > { %v1584_v8 = vpop.xlane.xlu0 %1583  ;;  %v1329_v32 = vpop.xlane.xlu1 %1328  ;;  %v1708_v30 = vmul.f32 %v2481_v19, %v3317_v38 }
 0x54c   : > { %2496 = vpow2.f32 %v1504_v46  ;;  %v1402_v33 = vsub.f32 %v3243_v51, %v1329_v32  ;;  %v1403_v18 = vsub.f32 %v3245_v52, %v1329_v32 }
 0x54d   : > { %v2483_v44 = vpop.eup %2482  ;;  %2498 = vpow2.f32 %v1506_v0 }
 0x54e   : > { %v1508_v1 = vmul.f32 1.442695, %v1402_v33  ;;  %v1510_v5 = vmul.f32 1.442695, %v1403_v18  ;;  %v1711_v49 = vmul.f32 %v2483_v44, %v3327_v47  ;;  %2500 = vrcp.f32 %v1584_v8 }
 0x54f   : > { %v1320_v20 = vpop.xlane.xlu0 %1319  ;;  %v1587_v6 = vpop.xlane.xlu1 %1586  ;;  %v1710_v3 = vmul.f32 %v2483_v44, %v3325_v4 }
 0x550   : > { %2502 = vpow2.f32 %v1508_v1  ;;  %v1396_v51 = vsub.f32 %v3221_v59, %v1320_v20  ;;  %v1397_v52 = vsub.f32 %v3223_v63, %v1320_v20  ;;  %v1759_v10 = vpack.c.bf16 %v1711_v49, %v1709_v48 }
 0x551   : > { %v3527_v21 = vpop.eup %2484  ;;  %2504 = vpow2.f32 %v1510_v5  ;;  %v1758_v26 = vpack.c.bf16 %v1710_v3, %v1708_v30 }
 0x552   : > { %v3529_v39 = vpop.eup %2486  ;;  %v1496_v47 = vmul.f32 1.442695, %v1396_v51  ;;  %v1498_v29 = vmul.f32 1.442695, %v1397_v52  ;;  %2506 = vrcp.f32 %v1587_v6  ;;  %1776 = vmatprep.subr.bf16.mxu0 %v1759_v10 }
 0x553   : > { %v1578_v46 = vpop.xlane.xlu0 %1577  ;;  %1777 = vmatpush1.bf16.xpose.msra.mxu0 %v1758_v26  ;;  %v1323_v38 = vpop.xlane.xlu1 %1322  ;;  %v1618_v4 = vadd.f32 %v3529_v39, %v3527_v21 }
 0x554   : > { %v2489_v59 = vpop.eup %2488  ;;  %2508 = vpow2.f32 %v1496_v47  ;;  %v1398_v63 = vsub.f32 %v3229_v12, %v1323_v38  ;;  %v1399_v0 = vsub.f32 %v3231_v45, %v1323_v38 }
 0x555   : > { %v3535_v19 = vpop.eup %2490  ;;  %2510 = vpow2.f32 %v1498_v29  ;;  %1619 = vadd.xlane.f32.xlu0 %v1618_v4  ;;  %v1705_v48 = vmul.f32 %v2489_v59, %v3337_v34  ;;  %v1704_v6 = vmul.f32 %v2489_v59, %v3332_v31 }
 0x556   : > { %v3537_v8 = vpop.eup %2492  ;;  %v1500_v32 = vmul.f32 1.442695, %v1398_v63  ;;  %v1502_v33 = vmul.f32 1.442695, %v1399_v0  ;;  %2512 = vrcp.f32 %v1578_v46 }
 0x557   : > { %v2495_v18 = vpop.eup %2494  ;;  %v1314_v44 = vpop.xlane.xlu0 %1313  ;;  %v1621_v5 = vadd.f32 %v3537_v8, %v3535_v19 }
 0x558   : > { %v1581_v1 = vpop.xlane.xlu1 %1580  ;;  %2514 = vpow2.f32 %v1500_v32  ;;  %v1392_v12 = vsub.f32 %v3825_v16, %v1314_v44  ;;  %v1393_v45 = vsub.f32 %v3824_v15, %v1314_v44  ;;  %v1707_v49 = vmul.f32 %v2495_v18, %v3347_v27 }
 0x559   : > { %v3545_v20 = vpop.eup %2496  ;;  %2516 = vpow2.f32 %v1502_v33  ;;  %1622 = vadd.xlane.f32.xlu1 %v1621_v5  ;;  %v1706_v30 = vmul.f32 %v2495_v18, %v3342_v36 }
 0x55a   : > { %v3549_v3 = vpop.eup %2498  ;;  %v1488_v51 = vmul.f32 1.442695, %v1392_v12  ;;  %v1490_v52 = vmul.f32 1.442695, %v1393_v45  ;;  %2518 = vrcp.f32 %v1581_v1  ;;  %v1757_v34 = vpack.c.bf16 %v1707_v49, %v1705_v48 }
 0x55b   : > { %v1572_v10 = vpop.xlane.xlu0 %1571  ;;  %v1756_v16 = vpack.c.bf16 %v1706_v30, %v1704_v6  ;;  %v1612_v27 = vadd.f32 %v3549_v3, %v3545_v20  ;;  %v2501_v15 = vpop.eup %2500 }
 0x55c   : > { %v1317_v26 = vpop.xlane.xlu1 %1316  ;;  %2520 = vpow2.f32 %v1488_v51  ;;  %1778 = vmatprep.subr.bf16.mxu0 %v1757_v34  ;;  %v1700_v32 = vmul.f32 %v2501_v15, %v3354_v11 }
 0x55d   : > { %v1394_v47 = vsub.f32 %v3827_v50, %v1317_v26  ;;  %v1395_v31 = vsub.f32 %v3826_v58, %v1317_v26  ;;  %v3555_v36 = vpop.eup %2502  ;;  %2522 = vpow2.f32 %v1490_v52  ;;  %1779 = vmatpush1.bf16.xpose.msra.mxu0 %v1756_v16  ;;  %1613 = vadd.xlane.f32.xlu0 %v1612_v27  ;;  %v1701_v50 = vmul.f32 %v2501_v15, %v3359_v14 }
 0x55e   : > { %v3557_v29 = vpop.eup %2504  ;;  %2524 = vrcp.f32 %v1572_v10 }
 0x55f   : > { %v1492_v46 = vmul.f32 1.442695, %v1394_v47  ;;  %v1494_v38 = vmul.f32 1.442695, %v1395_v31  ;;  %v2507_v4 = vpop.eup %2506  ;;  %v1566_v59 = vpop.xlane.xlu0 %1565  ;;  %v1615_v0 = vadd.f32 %v3557_v29, %v3555_v36 }
 0x560   : > { %v1575_v63 = vpop.xlane.xlu1 %1574  ;;  %v1703_v58 = vmul.f32 %v2507_v4, %v3371_v25  ;;  %v1702_v33 = vmul.f32 %v2507_v4, %v3366_v43 }
 0x561   : > { %2526 = vpow2.f32 %v1492_v46  ;;  %v3565_v18 = vpop.eup %2508  ;;  %1616 = vadd.xlane.f32.xlu1 %v1615_v0 }
 0x562   : > { %2528 = vpow2.f32 %v1494_v38  ;;  %v3567_v44 = vpop.eup %2510  ;;  %v1755_v1 = vpack.c.bf16 %v1703_v58, %v1701_v50  ;;  %v1754_v5 = vpack.c.bf16 %v1702_v33, %v1700_v32 }
 0x563   : > { %2530 = vrcp.f32 %v1566_v59  ;;  %v1606_v14 = vadd.f32 %v3567_v44, %v3565_v18  ;;  %v2513_v12 = vpop.eup %2512  ;;  %v1560_v6 = vpop.xlane.xlu0 %1559 }
 0x564   : > { %2532 = vrcp.f32 %v1575_v63  ;;  %v1569_v48 = vpop.xlane.xlu1 %1568  ;;  %1780 = vmatprep.subr.bf16.mxu0 %v1755_v1  ;;  %v1697_v30 = vmul.f32 %v2513_v12, %v3383_v62  ;;  %v1696_v52 = vmul.f32 %v2513_v12, %v3378_v9  ;;  %v3852_v12 = vld [vmem:[#allocation26_spill] sm:$0xff] }
 0x565   : > { %v3571_v25 = vpop.eup %2514  ;;  %1781 = vmatpush1.bf16.xpose.msra.mxu0 %v1754_v5  ;;  %2534 = vrcp.f32 %v1569_v48  ;;  %1607 = vadd.xlane.f32.xlu0 %v1606_v14 }
 0x566   : > { %v3573_v11 = vpop.eup %2516 }
 0x567   : > { %v2519_v43 = vpop.eup %2518  ;;  %v1609_v49 = vadd.f32 %v3573_v11, %v3571_v25  ;;  %v1554_v31 = vpop.xlane.xlu0 %1553 }
 0x568   : > { %v1563_v45 = vpop.xlane.xlu1 %1562  ;;  %v1699_v51 = vmul.f32 %v2519_v43, %v3393_v42  ;;  %v1698_v34 = vmul.f32 %v2519_v43, %v3388_v40 }
 0x569   : > { %v3581_v10 = vpop.eup %2520  ;;  %2536 = vrcp.f32 %v1563_v45  ;;  %1610 = vadd.xlane.f32.xlu1 %v1609_v49 }
 0x56a   : > { %v3583_v16 = vpop.eup %2522  ;;  %v1753_v26 = vpack.c.bf16 %v1699_v51, %v1697_v30  ;;  %v1752_v27 = vpack.c.bf16 %v1698_v34, %v1696_v52  ;;  %2538 = vrcp.f32 %v1560_v6  ;;  %v3853_v51 = vld [vmem:[#allocation25_spill] sm:$0xff] }
 0x56b   : > { %v1600_v15 = vadd.f32 %v3583_v16, %v3581_v10  ;;  %v2525_v47 = vpop.eup %2524 }
 0x56c   : > { %1782 = vmatprep.subr.bf16.mxu0 %v1753_v26  ;;  %v1557_v9 = vpop.xlane.xlu1 %1556  ;;  %v1693_v4 = vmul.f32 %v2525_v47, %v3401_v24  ;;  %v1692_v63 = vmul.f32 %v2525_v47, %v3395_v22 }
 0x56d   : > { %1783 = vmatpush1.bf16.xpose.msra.mxu0 %v1752_v27  ;;  %1601 = vadd.xlane.f32.xlu0 %v1600_v15  ;;  %2540 = vrcp.f32 %v1557_v9  ;;  %v3856_v27 = vld [vmem:[#allocation27_spill] sm:$0xff] }
 0x56e   : > { %v3587_v62 = vpop.eup %2526  ;;  %2542 = vrcp.f32 %v1554_v31 }
 0x56f   : > { %v3589_v40 = vpop.eup %2528 }
 0x570   : > { %v2531_v42 = vpop.eup %2530  ;;  %v1603_v46 = vadd.f32 %v3589_v40, %v3587_v62 }
 0x571   : > { %v2533_v38 = vpop.eup %2532  ;;  %v1689_v33 = vmul.f32 %v2531_v42, %v3413_v60 }
 0x572   : > { %1604 = vadd.xlane.f32.xlu1 %v1603_v46  ;;  %v1695_v59 = vmul.f32 %v2533_v38, %v3405_v7  ;;  %v1694_v0 = vmul.f32 %v2533_v38, %v3403_v2  ;;  %v2535_v50 = vpop.eup %2534  ;;  %v1688_v2 = vmul.f32 %v2531_v42, %v3407_v17  ;;  %v3857_v46 = vld [vmem:[#allocation39_spill] sm:$0xff] }
 0x573   : > { %v1691_v1 = vmul.f32 %v2535_v50, %v3417_v28  ;;  %v1690_v7 = vmul.f32 %v2535_v50, %v3415_v37  ;;  %v3854_v37 = vld [vmem:[#allocation40_spill] sm:$0xff] }
 0x574   : > { %v1751_v58 = vpack.c.bf16 %v1695_v59, %v1693_v4  ;;  %v1750_v32 = vpack.c.bf16 %v1694_v0, %v1692_v63  ;;  %v3858_v4 = vld [vmem:[#allocation28_spill] sm:$0xff] }
 0x575   : > { %v1749_v5 = vpack.c.bf16 %v1691_v1, %v1689_v33  ;;  %v1748_v45 = vpack.c.bf16 %v1690_v7, %v1688_v2 }
 0x576   : > { %1784 = vmatprep.subr.bf16.mxu0 %v1751_v58  ;;  %v2537_v48 = vpop.eup %2536 }
 0x577   : > { %1785 = vmatpush1.bf16.xpose.msra.mxu0 %v1750_v32  ;;  %v2539_v24 = vpop.eup %2538  ;;  %v1687_v22 = vmul.f32 %v2537_v48, %v3429_v54  ;;  %v1686_v52 = vmul.f32 %v2537_v48, %v3853_v51  ;;  %v3855_v54 = vld [vmem:[#allocation24_spill] sm:$0xff] }
 0x578   : > { %1786 = vmatprep.subr.bf16.mxu0 %v1749_v5  ;;  %v1685_v43 = vmul.f32 %v2539_v24, %v3852_v12  ;;  %v1684_v26 = vmul.f32 %v2539_v24, %v3855_v54 }
 0x57a   : > { %v2541_v49 = vpop.eup %2540  ;;  %v1747_v60 = vpack.c.bf16 %v1687_v22, %v1685_v43  ;;  %v1746_v47 = vpack.c.bf16 %v1686_v52, %v1684_v26  ;;  %v3861_v52 = vld [vmem:[#allocation30_spill] sm:$0xff]  ;;  %v3863_v26 = vld [vmem:[#allocation36_spill] sm:$0xff] }
 0x57b   : > { %v1644_v14 = vpop.xlane.xlu0 %1643  ;;  %v2543_v28 = vpop.eup %2542  ;;  %v1683_v34 = vmul.f32 %v2541_v49, %v3854_v37  ;;  %v1682_v38 = vmul.f32 %v2541_v49, %v3857_v46  ;;  %v3859_v49 = vld [vmem:[#allocation38_spill] sm:$0xff] }
 0x57c   : > { %2544 = vrcp.f32 %v1644_v14  ;;  %v1681_v15 = vmul.f32 %v2543_v28, %v3856_v27  ;;  %v1680_v59 = vmul.f32 %v2543_v28, %v3858_v4 }
 0x57e   : > { %v1745_v9 = vpack.c.bf16 %v1683_v34, %v1681_v15  ;;  %v1744_v0 = vpack.c.bf16 %v1682_v38, %v1680_v59  ;;  %v3862_v34 = vld [vmem:[#allocation35_spill] sm:$0xff]  ;;  %v3865_v15 = vld [vmem:[#allocation33_spill] sm:$0xff] }
 0x57f   : > { %1787 = vmatpush1.bf16.xpose.msra.mxu0 %v1748_v45  ;;  %v1638_v6 = vpop.xlane.xlu0 %1637 }
 0x580   : > { %1788 = vmatprep.subr.bf16.mxu0 %v1747_v60 }
 0x581   : > { %v1647_v30 = vpop.xlane.xlu1 %1646 }
 0x582   : > { %2546 = vrcp.f32 %v1647_v30 }
 0x583   : > { %2548 = vrcp.f32 %v1638_v6  ;;  %v1632_v31 = vpop.xlane.xlu0 %1631 }
 0x585   : > { %v1641_v17 = vpop.xlane.xlu1 %1640 }
 0x586   : > { %2550 = vrcp.f32 %v1641_v17 }
 0x587   : > { %1789 = vmatpush1.bf16.xpose.msra.mxu0 %v1746_v47  ;;  %v1626_v48 = vpop.xlane.xlu0 %1625 }
 0x588   : > { %1790 = vmatprep.subr.bf16.mxu0 %v1745_v9 }
 0x589   : > { %v1635_v42 = vpop.xlane.xlu1 %1634  ;;  %v2545_v63 = vpop.eup %2544 }
 0x58a   : > { %2552 = vrcp.f32 %v1635_v42  ;;  %v1741_v32 = vmul.f32 %v2545_v63, %v3467_v35  ;;  %v1740_v7 = vmul.f32 %v2545_v63, %v3465_v41 }
 0x58b   : > { %2554 = vrcp.f32 %v1632_v31 }
 0x58d   : > { %v1629_v58 = vpop.xlane.xlu1 %1628 }
 0x58e   : > { %2556 = vrcp.f32 %v1629_v58 }
 0x58f   : > { %v2547_v50 = vpop.eup %2546  ;;  %1791 = vmatpush1.bf16.xpose.msra.mxu0 %v1744_v0  ;;  %2558 = vrcp.f32 %v1626_v48 }
 0x590   : > { %v1743_v33 = vmul.f32 %v2547_v50, %v3479_v57  ;;  %v1742_v1 = vmul.f32 %v2547_v50, %v3475_v53  ;;  %v2549_v5 = vpop.eup %2548 }
 0x591   : > { %v1737_v2 = vmul.f32 %v2549_v5, %v3473_v13  ;;  %v1736_v41 = vmul.f32 %v2549_v5, %v3471_v55  ;;  %v3864_v55 = vld [vmem:[#allocation29_spill] sm:$0xff] }
 0x592   : > { %v1775_v24 = vpack.c.bf16 %v1743_v33, %v1741_v32  ;;  %v1774_v22 = vpack.c.bf16 %v1742_v1, %v1740_v7 }
 0x593   : > { %v2551_v14 = vpop.eup %2550 }
 0x594   : > { %1792 = vmatprep.subr.bf16.mxu0 %v1775_v24  ;;  %v1739_v12 = vmul.f32 %v2551_v14, %v3491_v56  ;;  %v1738_v53 = vmul.f32 %v2551_v14, %v3487_v23  ;;  %v3860_v56 = vld [vmem:[#allocation37_spill] sm:$0xff] }
 0x596   : > { %v1773_v43 = vpack.c.bf16 %v1739_v12, %v1737_v2  ;;  %v1772_v28 = vpack.c.bf16 %v1738_v53, %v1736_v41 }
 0x597   : > { %v2553_v35 = vpop.eup %2552  ;;  %1793 = vmatpush2.bf16.xpose.msra.mxu0 %v1774_v22 }
 0x598   : > { %1794 = vmatprep.subr.bf16.mxu0 %v1773_v43  ;;  %v2555_v57 = vpop.eup %2554  ;;  %v1735_v45 = vmul.f32 %v2553_v35, %v3503_v61  ;;  %v1734_v51 = vmul.f32 %v2553_v35, %v3860_v56 }
 0x599   : > { %v1733_v60 = vmul.f32 %v2555_v57, %v3859_v49  ;;  %v1732_v54 = vmul.f32 %v2555_v57, %v3862_v34 }
 0x59b   : > { %v1771_v6 = vpack.c.bf16 %v1735_v45, %v1733_v60  ;;  %v2557_v30 = vpop.eup %2556  ;;  %v1770_v17 = vpack.c.bf16 %v1734_v51, %v1732_v54  ;;  %v3869_v51 = vld [vmem:[#allocation22_spill] sm:$0xff] }
 0x59c   : > { %v2559_v13 = vpop.eup %2558  ;;  %v1731_v37 = vmul.f32 %v2557_v30, %v3861_v52  ;;  %v1730_v27 = vmul.f32 %v2557_v30, %v3864_v55  ;;  %v900_v30 = vld [vmem:[#allocation3 + $0x8] sm:$0xff] }
 0x59d   : > { %v1729_v23 = vmul.f32 %v2559_v13, %v3863_v26  ;;  %v1728_v47 = vmul.f32 %v2559_v13, %v3865_v15  ;;  %v3868_v13 = vld [vmem:[#allocation21_spill] sm:$0xff] }
 0x59f   : > { %1795 = vmatpush2.bf16.xpose.msra.mxu0 %v1772_v28  ;;  %v1769_v61 = vpack.c.bf16 %v1731_v37, %v1729_v23  ;;  %v1768_v9 = vpack.c.bf16 %v1730_v27, %v1728_v47 }
 0x5a0   : > { %1796 = vmatprep.subr.bf16.mxu0 %v1771_v6  ;;  %v899_v6 = vld [vmem:[#allocation3] sm:$0xff] }
 0x5a1   : > { %v901_v56 = vadd.f32 %v899_v6, %v3868_v13 }
 0x5a7   : > { %1797 = vmatpush2.bf16.xpose.msra.mxu0 %v1770_v17 }
 0x5a8   : > { %1798 = vmatprep.subr.bf16.mxu0 %v1769_v61 }
 0x5af   : > { %1799 = vmatpush2.bf16.xpose.msra.mxu0 %v1768_v9 }
 0x5de   : > { %v1620_v42 = vpop.xlane.xlu0 %1619 }
 0x5df   : > { %2560 = vrcp.f32 %v1620_v42 }
 0x5e2   : > { %v1623_v31 = vpop.xlane.xlu1 %1622 }
 0x5e3   : > { %2562 = vrcp.f32 %v1623_v31 }
 0x5e6   : > { %v1614_v46 = vpop.xlane.xlu0 %1613 }
 0x5e7   : > { %2564 = vrcp.f32 %v1614_v46 }
 0x5ea   : > { %v1617_v38 = vpop.xlane.xlu1 %1616 }
 0x5eb   : > { %2566 = vrcp.f32 %v1617_v38 }
 0x5ec   : > { %v2561_v4 = vpop.eup %2560 }
 0x5ed   : > { %v1725_v0 = vmul.f32 %v2561_v4, %v3529_v39  ;;  %v1724_v58 = vmul.f32 %v2561_v4, %v3527_v21 }
 0x5ee   : > { %v1608_v59 = vpop.xlane.xlu0 %1607 }
 0x5ef   : > { %2568 = vrcp.f32 %v1608_v59 }
 0x5f0   : > { %v2563_v63 = vpop.eup %2562 }
 0x5f1   : > { %v1727_v50 = vmul.f32 %v2563_v63, %v3537_v8  ;;  %v1726_v32 = vmul.f32 %v2563_v63, %v3535_v19 }
 0x5f2   : > { %v1611_v33 = vpop.xlane.xlu1 %1610 }
 0x5f3   : > { %2570 = vrcp.f32 %v1611_v33  ;;  %v1767_v1 = vpack.c.bf16 %v1727_v50, %v1725_v0  ;;  %v1766_v5 = vpack.c.bf16 %v1726_v32, %v1724_v58 }
 0x5f4   : > { %v2565_v48 = vpop.eup %2564 }
 0x5f5   : > { %1800 = vmatprep.subr.bf16.mxu0 %v1767_v1  ;;  %v1721_v14 = vmul.f32 %v2565_v48, %v3549_v3  ;;  %v1720_v8 = vmul.f32 %v2565_v48, %v3545_v20 }
 0x5f6   : > { %v1602_v24 = vpop.xlane.xlu0 %1601  ;;  %1801 = vmatpush2.bf16.xpose.msra.mxu0 %v1766_v5 }
 0x5f7   : > { %2572 = vrcp.f32 %v1602_v24 }
 0x5f8   : > { %v2567_v7 = vpop.eup %2566 }
 0x5f9   : > { %v1723_v39 = vmul.f32 %v2567_v7, %v3557_v29  ;;  %v1722_v21 = vmul.f32 %v2567_v7, %v3555_v36 }
 0x5fb   : > { %v1605_v22 = vpop.xlane.xlu1 %1604  ;;  %v1765_v19 = vpack.c.bf16 %v1723_v39, %v1721_v14  ;;  %v1764_v2 = vpack.c.bf16 %v1722_v21, %v1720_v8 }
 0x5fc   : > { %2574 = vrcp.f32 %v1605_v22  ;;  %v2569_v12 = vpop.eup %2568 }
 0x5fd   : > { %1802 = vmatprep.subr.bf16.mxu0 %v1765_v19  ;;  %v1717_v35 = vmul.f32 %v2569_v12, %v3567_v44  ;;  %v1716_v3 = vmul.f32 %v2569_v12, %v3565_v18  ;;  %v3866_v18 = vld [vmem:[#allocation23_spill] sm:$0xff] }
 0x5fe   : > { %1803 = vmatpush2.bf16.xpose.msra.mxu0 %v1764_v2 }
 0x600   : > { %v2571_v43 = vpop.eup %2570 }
 0x601   : > { %v1719_v57 = vmul.f32 %v2571_v43, %v3573_v11  ;;  %v1718_v29 = vmul.f32 %v2571_v43, %v3571_v25  ;;  %v3867_v25 = vpack.c.bf16 %v3866_v18, %v3866_v18 }
 0x603   : > { %v1763_v53 = vpack.c.bf16 %v1719_v57, %v1717_v35  ;;  %v1762_v20 = vpack.c.bf16 %v1718_v29, %v1716_v3 }
 0x604   : > { %v2573_v36 = vpop.eup %2572 }
 0x605   : > { %1804 = vmatprep.subr.bf16.mxu0 %v1763_v53  ;;  %v1713_v41 = vmul.f32 %v2573_v36, %v3583_v16  ;;  %v1712_v60 = vmul.f32 %v2573_v36, %v3581_v10  ;;  %v902_v16 = vadd.f32 %v900_v30, %v3869_v51 }
 0x606   : > { %1805 = vmatpush2.bf16.xpose.msra.mxu0 %v1762_v20 }
 0x609   : > { %v2575_v45 = vpop.eup %2574 }
 0x60a   : > { %v1715_v49 = vmul.f32 %v2575_v45, %v3589_v40  ;;  %v1714_v44 = vmul.f32 %v2575_v45, %v3587_v62 }
 0x60c   : > { %v1761_v28 = vpack.c.bf16 %v1715_v49, %v1713_v41  ;;  %v1760_v11 = vpack.c.bf16 %v1714_v44, %v1712_v60 }
 0x60e   : > { %1806 = vmatprep.subr.bf16.mxu0 %v1761_v28 }
 0x60f   : > { %1807 = vmatpush2.bf16.xpose.msra.mxu0 %v1760_v11 }
 0x616   : > { %1809 = vmatmul.mubr.bf16.vlgmr.msra.gmra.mxu0 %v3867_v25 }
 0x6d6   : > { %v1810_v52 = vpop.f32.mrf.mxu0 }
 0x6d7   : > { %v1819_v40 = vadd.f32 %v1810_v52, %v901_v56 }
 0x6d8   : > { %v1812_v37 = vpop.f32.mrf.mxu0  ;;  %1826 = sbr.rel (%p2121_p3) target bundleno = 1973 (0x7b5), region = 76 }
 0x6d9   : > { %1821 = vst [vmem:[#allocation3] sm:$0xff] %v1819_v40  ;;  %v1820_v10 = vadd.f32 %v1812_v37, %v902_v16 }
 0x6da   : > { %v1814_v62 = vpop.f32.mrf.mxu0 }
 0x6db   : > { %1822 = vst [vmem:[#allocation3 + $0x8] sm:$0xff] %v1820_v10 }
 0x6dc   : > { %v1815_v34 = vpop.f32.mrf.mxu0 }
 0x6dd   : > { %v2764_v61 = vmov 0   ;;  %v1835_v55 = vld [vmem:[%s3870_s27] sm:$0xff]  ;;  %v1836_v47 = vld [vmem:[%s3870_s27 + $0x8] sm:$0xff] }
 0x6de   : > { %1893 = vmatprep.mubr.bf16.mxu0 %v2764_v61  ;;  %2576 = vset.pattern.permute.xlu0 %v2764_v61  ;;  %v2577_v42 = vld [vmem:[%s3871_s11] sm:$0xff]  }
 0x6df   : > { %1839 = vperm.xlu0 %2576, %v1835_v55  }
 0x6e0   : > { %v1827_v26 = vld [vmem:[#allocation3] sm:$0xff] }
 0x6e1   : > { %v1829_v17 = vmul.f32 0.16666667, %v1827_v26 }
 0x6e2   : > { %v1828_v54 = vld [vmem:[#allocation3 + $0x8] sm:$0xff] }
 0x6e3   : > { %v1830_v23 = vmul.f32 0.16666667, %v1828_v54  ;;  %v1831_v15 = vpack.c.bf16 %v1829_v17, %v1829_v17  ;;  %1844 = vperm.xlu0 %2576, %v1836_v47  }
 0x6e5   : > { %v1832_v27 = vpack.c.bf16 %v1830_v23, %v1830_v23  ;;  %v1856_v9 = vsel %vm497_vm0, %v1831_v15, 0 }
 0x6e7   : > { %2123 = vmatprep.subr.msk.bf16.mxu0 %vm497_vm0, %v1832_v27 }
 0x6e8   : > { %1876 = vmatpush1.bf16.msra.mxu0 %v1856_v9 }
 0x6eb   : > { %2124 = vmatmul.mubr.msk.bf16.vlgmr.msra.gmra.mxu0 %vm493_vm1, %v2577_v42 }
 0x75a   : > { %v1840_v31 = vpop.permute.xlu0 %1839 }
 0x75e   : > { %v1845_v63 = vpop.permute.xlu0 %1844 }
 0x7ab   : > { %v1895_v46 = vpop.f32.mrf.mxu0 }
 0x7ac   : > { %v1896_v38 = vadd.f32 %v1895_v46, %v1840_v31 }
 0x7ad   : > { %v1897_v4 = vpop.f32.mrf.mxu0 }
 0x7ae   : > { %1904 = vst [vmem:[%s3083_s8] sm:$0xff] %v1896_v38  ;;  %v1898_v59 = vadd.f32 %v1897_v4, %v1840_v31 }
 0x7af   : > { %v1899_v0 = vpop.f32.mrf.mxu0 }
 0x7b0   : > { %1905 = vst [vmem:[%s3083_s8 + $0x8] sm:$0xff] %v1898_v59  ;;  %v1900_v50 = vadd.f32 %v1899_v0, %v1845_v63 }
 0x7b1   : > { %v1901_v58 = vpop.f32.mrf.mxu0 }
 0x7b2   : > { %1906 = vst [vmem:[%s3083_s8 + $0x10] sm:$0xff] %v1900_v50  ;;  %v1902_v32 = vadd.f32 %v1901_v58, %v1845_v63 }
 0x7b4   : > { %1907 = vst [vmem:[%s3083_s8 + $0x18] sm:$0xff] %v1902_v32 }
 0x7b5 PF: > { %s3872_s9 = sld [smem:[#allocation14_spill]]  ;;  %s1922_s24 = sshll.u32 %s3083_s8, 4  ;;  %s3670_s24 = int_to_ptr.vmem [resolvable:$true] %s1922_s24 }
 0x7b6   : > { %s3873_s25 = sld [smem:[#allocation44_spill]]  ;;  %s3674_s22 = scalar_lea.sflag [#allocation6], %s435_s18 }
 0x7b7   : > { %s2634_s12 = scalar_lea.vmem %s3670_s24, 512  ;;  %s2765_s16 = smov [#allocation9]  }
 0x7b8   : > { %p2635_p8 = scmp.ne.s32.totalorder %s3670_s24, %s2634_s12  ;;  %s2638_s30 = sshll.u32 %s2765_s16, 4  ;;  %s2639_s30 = int_to_ptr.vmem [resolvable:$false] %s2638_s30 }
 0x7b9   : > { %s2640_s19 = scalar_lea.vmem %s2639_s30, 1024  ;;  %p2641_p10 = scmp.lt.s32.totalorder %s3670_s24, %s2639_s30 }
 0x7ba   : > { %p2636_p1 = pnand %p2635_p8, %p2912_p13  ;;  %p2642_p11 = scmp.lt.s32.totalorder %s2640_s19, %s2634_s12 }
 0x7bb   : > { %s2164_s28 = sshll.u32 %s3872_s9, 9 }
 0x7bc   : > { %s3667_s10 = scalar_lea.hbm %s3873_s25, %s2164_s28  ;;  %p2637_p9 = pneg %p2636_p1 }
 0x7bd   : > { %p2643_p5 = por %p2642_p11, %p2641_p10 }
 0x7bf   : > { %p2644_p4 = pnand %p2643_p5, %p2637_p9 }
 0x7c1   : > { %2647 = shalt.err (!%p2644_p4)
}
 0x7c2   : > { %s2648_s18 = scalar_lea.hbm %s3667_s10, 512  ;;  %s2652_s11 = scalar_lea.hbm %s3873_s25, 1024 }
 0x7c3   : > { %p2649_p6 = scmp.ne.s32.totalorder %s3667_s10, %s2648_s18  ;;  %p2653_p7 = scmp.lt.s32.totalorder %s3667_s10, %s3873_s25 }
 0x7c4   : > { %p2654_p3 = scmp.lt.s32.totalorder %s2652_s11, %s2648_s18 }
 0x7c5   : > { %p2650_p12 = pnand %p2649_p6, %p2912_p13 }
 0x7c6   : > { %p2655_p8 = por %p2654_p3, %p2653_p7 }
 0x7c7   : > { %p2651_p0 = pneg %p2650_p12 }
 0x7c9   : > { %p2656_p1 = pnand %p2655_p8, %p2651_p0 }
 0x7cb   : > { %2659 = shalt.err (!%p2656_p1)
}
 0x7cc   : > { %s2766_s29 = smov 256   ;;  %s2767_s0 = smov 16  }
 0x7cd   : > { %2169 = dma.vmem_to_hbm [thread:$0]  (%p2912_p13), %s3670_s24, 512, %s3667_s10, %s3674_s22, %s2766_s29, %s2766_s29, %s2767_s0  }
 0x7ce PF: > { %p2183_p9 = scmp.ge.s32.totalorder %s2758_s23, 2  ;;  %s1937_s12 = sand.u32 1, %s2718_s13  }
 0x7cf   : > { %s1938_s16 = scalar_lea.sflag [#allocation6], %s1937_s12 }
 0x7d0   : > { %p2179_p10 = pnand %p2183_p9, %p2928_p2 }
 0x7d2   : > { %p2180_p11 = pneg %p2179_p10 }
 0x7d4   : > { %2713 = dma.done.wait (%p2180_p11), %s1938_s16, 512  }
 0x7d5   : > { %2715 = vsyncadd (%p2180_p11), %s1938_s16, 4294966784  ;;  %s29_s23 = sadd.s32 1, %s2758_s23   ;;  %s3874_s30 = sld [smem:[#allocation19_spill]] }
 0x7d6   : > { %p26_p5 = scmp.ge.s32.totalorder %s29_s23, 14   ;;  %s3875_s20 = sld [smem:[#allocation13_spill]] }
 0x7d7   : > { %s3876_s18 = sld [smem:[#allocation20_spill]]  ;;  %s3881_s13 = smov %s2722_s14 }
 0x7d8   : > { %s3877_s19 = sld [smem:[#allocation15_spill]]  ;;  %s3882_s14 = smov %s2726_s15 }
 0x7d9   : > { %s3878_s10 = sld [smem:[#allocation16_spill]]  ;;  %s3884_s16 = smov %s2734_s17 }
 0x7da   : > { %s3879_s21 = sld [smem:[#allocation17_spill]] }
 0x7db   : > { %s3880_s22 = sld [smem:[#allocation18_spill]]  ;;  %s3883_s15 = smov %s3874_s30 }
 0x7dc   : > { %s3885_s17 = smov %s3875_s20  ;;  %28 = sbr.rel (!%p26_p5) target bundleno = 16 (0x10), region = 126 }
 0x7df   : > { %s3886_s20 = smov %s3878_s10 }
 0x7e1   :  { %1943 = vsyncpa [#allocation5], 1 }
 0x7e2   :  { %1945 = vsyncpa [#allocation5 + $0x1], 1 }
 0x7e3   :  { %1946 = vsyncpa [#allocation8], 1 }
 0x7e4   :  { %1948 = vsyncpa [#allocation8 + $0x1], 1 }
 0x7e5   :  { %1949 = vsyncpa [#allocation6], 1 }
 0x7e6   :  { %1951 = vsyncpa [#allocation6 + $0x1], 1 }

</bundles_post_ra>
